<compile_context>
chip_gen: v6e
topology: v6e:2x2x1
jax: 0.10.0
libtpu: 0.0.40
codegen_flags: <defaults>
</compile_context>

<pallas_src>
import jax
import jax.numpy as jnp
from jax import lax
from jax.experimental import pallas as pl
from jax.experimental.pallas import tpu as pltpu


def _round_up(x, m):
    return ((x + m - 1) // m) * m


def _pad_gates(a, h, hp):
    """Pad the trailing 4*h gate axis to 4*hp, per-gate (PyTorch i,f,g,o order)."""
    if h == hp:
        return a
    lead = a.shape[:-1]
    a4 = a.reshape(lead + (4, h))
    pad = [(0, 0)] * (a4.ndim - 1) + [(0, hp - h)]
    return jnp.pad(a4, pad).reshape(lead + (4 * hp,))


def lstm_recurrence_kernel(xp_ref, whh_ref, hout_ref, h_sc, c_sc):
    """One grid step = Tc timesteps of the LSTM recurrence for one batch tile.

    xp_ref : (Tc, Bt, 4*Hp) f32   precomputed x_t @ W_ih^T + bias (gate-padded)
    whh_ref: (Hp, 4*Hp)    bf16  recurrent weights (grid-invariant)
    hout_ref: (Bt, Hp)     f32   final hidden state (written on last chunk)
    h_sc/c_sc: (Bt, Hp)    f32   persistent recurrent state
    """
    t_chunk = pl.program_id(1)

    @pl.when(t_chunk == 0)
    def _():
        h_sc[...] = jnp.zeros_like(h_sc)
        c_sc[...] = jnp.zeros_like(c_sc)

    hp = h_sc.shape[1]
    tc_steps = xp_ref.shape[0]

    def step(tc, carry):
        h, c = carry
        # Only the recurrent matmul is on the serial path; operands in bf16,
        # accumulate in f32.  Gate elementwise math stays f32 (v5e EUP/VPU).
        gates = xp_ref[tc] + jnp.dot(
            h.astype(whh_ref.dtype), whh_ref[...],
            preferred_element_type=jnp.float32)
        i = jax.nn.sigmoid(gates[:, 0 * hp:1 * hp])
        f = jax.nn.sigmoid(gates[:, 1 * hp:2 * hp])
        g = jnp.tanh(gates[:, 2 * hp:3 * hp])
        o = jax.nn.sigmoid(gates[:, 3 * hp:4 * hp])
        c_new = f * c + i * g
        h_new = o * jnp.tanh(c_new)
        return h_new, c_new

    h, c = lax.fori_loop(0, tc_steps, step, (h_sc[...], c_sc[...]), unroll=True)
    h_sc[...] = h
    c_sc[...] = c

    @pl.when(t_chunk == pl.num_programs(1) - 1)
    def _():
        hout_ref[...] = h.astype(hout_ref.dtype)


def _choose_time_chunk(T, Bt, Hp, budget_bytes=2 * 1024 * 1024):
    """Largest divisor of T whose (Tc, Bt, 4Hp) f32 slab fits the chunk budget."""
    best = 1
    for tc in range(1, T + 1):
        if T % tc == 0 and tc * Bt * 4 * Hp * 4 <= budget_bytes:
            best = tc
    return best


def rnn_forward(x_tokens, params):
    """x_tokens: int32 [B, T] token ids. Returns logits [B, O]."""
    emb_table = params["embedding"]          # (V, E)
    w_ih = params["weight_ih"]               # (4H, E)  (PyTorch layout)
    w_hh = params["weight_hh"]               # (4H, H)
    b_ih = params["bias_ih"]                 # (4H,)
    b_hh = params["bias_hh"]                 # (4H,)
    w_fc = params["fc_weight"]               # (O, H)
    b_fc = params["fc_bias"]                 # (O,)

    B, T = x_tokens.shape
    H = w_hh.shape[1]

    # ---- padded / tiled sizes -------------------------------------------
    Hp = _round_up(H, 128)                   # lane-aligned gate blocks
    Bt = min(128, _round_up(B, 8))           # batch tile (sublane-aligned)
    Bp = _round_up(B, Bt)                    # padded batch
    nb = Bp // Bt
    Tc = _choose_time_chunk(T, Bt, Hp)       # timesteps per grid step
    nt = T // Tc

    # ---- glue (plain JAX): embedding gather + hoisted input projection ---
    # Gather directly in time-major order (transpose only the tiny int matrix),
    # so no (B, T, E) activation transpose is materialized.
    tokens_tm = x_tokens.T                                   # (T, B) int32
    embedded_tm = jnp.take(emb_table, tokens_tm, axis=0)     # (T, B, E)
    # dropout: identity (eval-mode semantics)

    wih_t = _pad_gates(jnp.transpose(w_ih), H, Hp)           # (E, 4Hp)
    bias = _pad_gates(b_ih + b_hh, H, Hp)                    # (4Hp,)
    # One big throughput-bound matmul instead of T tiny serial ones.
    x_proj = jnp.einsum("tbe,eg->tbg", embedded_tm, wih_t) + bias   # (T, B, 4Hp) f32
    if Bp != B:
        x_proj = jnp.pad(x_proj, ((0, 0), (0, Bp - B), (0, 0)))

    # Recurrent weights: gate-padded, row-padded, bf16 for the MXU.
    whh_t = _pad_gates(jnp.transpose(w_hh), H, Hp)           # (H, 4Hp)
    whh_t = jnp.pad(whh_t, ((0, Hp - H), (0, 0)))            # (Hp, 4Hp)
    whh_bf16 = whh_t.astype(jnp.bfloat16)

    # ---- explicit VMEM budget (double buffers + scratch), with headroom --
    chunk_bytes = Tc * Bt * 4 * Hp * 4
    whh_bytes = Hp * 4 * Hp * 2
    out_bytes = Bt * Hp * 4
    scratch_bytes = 2 * Bt * Hp * 4
    need = 2 * chunk_bytes + 2 * whh_bytes + 2 * out_bytes + scratch_bytes
    vmem_limit = int(min(48 * 1024 * 1024, max(16 * 1024 * 1024, 2 * need)))

    h_final = pl.pallas_call(
        lstm_recurrence_kernel,
        out_shape=jax.ShapeDtypeStruct((Bp, Hp), jnp.float32),
        grid_spec=pltpu.PrefetchScalarGridSpec(
            num_scalar_prefetch=0,
            grid=(nb, nt),                                   # (batch tiles, time chunks)
            in_specs=[
                pl.BlockSpec((Tc, Bt, 4 * Hp), lambda b, t: (t, b, 0)),  # gate-proj slab
                pl.BlockSpec((Hp, 4 * Hp), lambda b, t: (0, 0)),         # W_hh^T (invariant)
            ],
            out_specs=pl.BlockSpec((Bt, Hp), lambda b, t: (b, 0)),
            scratch_shapes=[
                pltpu.VMEM((Bt, Hp), jnp.float32),   # h state
                pltpu.VMEM((Bt, Hp), jnp.float32),   # c state
            ],
        ),
        compiler_params=pltpu.CompilerParams(
            # batch axis is parallel (usable by v7x's 2nd TC); time is sequential
            dimension_semantics=("parallel", "arbitrary"),
            vmem_limit_bytes=vmem_limit),
    )(x_proj, whh_bf16)

    # ---- final hidden -> (identity dropout) -> Linear, in plain JAX -------
    h_last = h_final[:B, :H]                                  # (B, H)
    logits = h_last @ jnp.transpose(w_fc) + b_fc              # (B, O)
    return logits


def init_params(key, vocab_size, embedding_dim, hidden_dim, output_dim):
    ks = jax.random.split(key, 7)
    s = 0.1
    return {
        "embedding": jax.random.normal(ks[0], (vocab_size, embedding_dim), jnp.float32) * s,
        "weight_ih": jax.random.normal(ks[1], (4 * hidden_dim, embedding_dim), jnp.float32) * s,
        "weight_hh": jax.random.normal(ks[2], (4 * hidden_dim, hidden_dim), jnp.float32) * s,
        "bias_ih":   jax.random.normal(ks[3], (4 * hidden_dim,), jnp.float32) * s,
        "bias_hh":   jax.random.normal(ks[4], (4 * hidden_dim,), jnp.float32) * s,
        "fc_weight": jax.random.normal(ks[5], (output_dim, hidden_dim), jnp.float32) * s,
        "fc_bias":   jax.random.normal(ks[6], (output_dim,), jnp.float32) * s,
    }


if __name__ == "__main__":
    VOCAB, E, H, O = 100, 32, 32, 4
    B, T = 2, 8

    key = jax.random.PRNGKey(0)
    k_param, k_tok = jax.random.split(key)
    params = init_params(k_param, VOCAB, E, H, O)
    x_tokens = jax.random.randint(k_tok, (B, T), 0, VOCAB, dtype=jnp.int32)

    logits = rnn_forward(x_tokens, params)
    jax.block_until_ready(logits)
    assert logits.shape == (B, O)
    print("KERNEL_OK")
</pallas_src>

<mosaic_0001>
module attributes {stable_mosaic.version = 11 : i64} {
  func.func @lstm_recurrence_kernel(%arg0: i32, %arg1: i32, %arg2: memref<8x8x512xf32, #tpu.memory_space<vmem>>, %arg3: memref<128x512xbf16, #tpu.memory_space<vmem>>, %arg4: memref<8x128xf32, #tpu.memory_space<vmem>>, %arg5: memref<8x128xf32, #tpu.memory_space<vmem>>, %arg6: memref<8x128xf32, #tpu.memory_space<vmem>>) attributes {dimension_semantics = [#tpu.dimension_semantics<parallel>, #tpu.dimension_semantics<arbitrary>], iteration_bounds = array<i64: 1, 1>, scalar_prefetch = 0 : i64, scratch_operands = 2 : i64, tpu.core_type = #tpu.core_type<tc>, window_params = [{transform_indices = @transform_0, window_bounds = array<i64: 8, 8, 512>}, {pipeline_mode = #tpu.pipeline_mode<synchronous>, transform_indices = @transform_1, window_bounds = array<i64: 128, 512>}, {transform_indices = @transform_2, window_bounds = array<i64: 8, 128>}]} {
    %c0_i32 = arith.constant 0 : i32
    %0 = arith.cmpi eq, %arg1, %c0_i32 : i32
    %1 = arith.extui %0 : i1 to i32
    %c0_i32_0 = arith.constant 0 : i32
    %2 = arith.cmpi ne, %1, %c0_i32_0 : i32
    scf.if %2 {
      %cst_74 = arith.constant 0.000000e+00 : f32
      %266 = vector.broadcast %cst_74 : f32 to vector<8x128xf32>
      %c0_75 = arith.constant 0 : index
      %c0_76 = arith.constant 0 : index
      %267 = vector.load %arg5[%c0_75, %c0_76] : memref<8x128xf32, #tpu.memory_space<vmem>>, vector<8x128xf32>
      tpu.vector_store %arg5[%c0_75, %c0_76], %266 {strides = array<i32>} : memref<8x128xf32, #tpu.memory_space<vmem>>, vector<8x128xf32>,
      %cst_77 = arith.constant 0.000000e+00 : f32
      %268 = vector.broadcast %cst_77 : f32 to vector<8x128xf32>
      %c0_78 = arith.constant 0 : index
      %c0_79 = arith.constant 0 : index
      %269 = vector.load %arg6[%c0_78, %c0_79] : memref<8x128xf32, #tpu.memory_space<vmem>>, vector<8x128xf32>
      tpu.vector_store %arg6[%c0_78, %c0_79], %268 {strides = array<i32>} : memref<8x128xf32, #tpu.memory_space<vmem>>, vector<8x128xf32>,
    } else {
    }
    %c0 = arith.constant 0 : index
    %c0_1 = arith.constant 0 : index
    %3 = vector.load %arg5[%c0, %c0_1] : memref<8x128xf32, #tpu.memory_space<vmem>>, vector<8x128xf32>
    %c0_2 = arith.constant 0 : index
    %c0_3 = arith.constant 0 : index
    %4 = vector.load %arg6[%c0_2, %c0_3] : memref<8x128xf32, #tpu.memory_space<vmem>>, vector<8x128xf32>
    %c0_i32_4 = arith.constant 0 : i32
    %5 = arith.index_cast %c0_i32_4 : i32 to index
    %c0_5 = arith.constant 0 : index
    %c0_6 = arith.constant 0 : index
    %6 = vector.load %arg2[%5, %c0_5, %c0_6] : memref<8x8x512xf32, #tpu.memory_space<vmem>>, vector<1x8x512xf32>
    %7 = vector.shape_cast %6 : vector<1x8x512xf32> to vector<8x512xf32>
    %8 = arith.truncf %3 : vector<8x128xf32> to vector<8x128xbf16>
    %c0_7 = arith.constant 0 : index
    %c0_8 = arith.constant 0 : index
    %9 = vector.load %arg3[%c0_7, %c0_8] : memref<128x512xbf16, #tpu.memory_space<vmem>>, vector<128x512xbf16>
    %cst = arith.constant dense<0.000000e+00> : vector<8x512xf32>
    %10 = tpu.matmul %8, %9, %cst {dimension_numbers = #tpu.dot_dimension_numbers<[1], [0], [0], [1], [0, 0, 1, 1], [], []>} : vector<8x128xbf16>, vector<128x512xbf16>, vector<8x512xf32> -> vector<8x512xf32>
    %11 = arith.addf %7, %10 : vector<8x512xf32>
    %12 = vector.extract_strided_slice %11 {offsets = [0, 0], sizes = [8, 128], strides = [1, 1]} : vector<8x512xf32> to vector<8x128xf32>
    %13 = arith.negf %12 : vector<8x128xf32>
    %14 = math.exp %13 : vector<8x128xf32>
    %cst_9 = arith.constant 1.000000e+00 : f32
    %15 = vector.broadcast %cst_9 : f32 to vector<8x128xf32>
    %16 = arith.addf %15, %14 : vector<8x128xf32>
    %17 = arith.divf %15, %16 : vector<8x128xf32>
    %18 = vector.extract_strided_slice %11 {offsets = [0, 128], sizes = [8, 128], strides = [1, 1]} : vector<8x512xf32> to vector<8x128xf32>
    %19 = arith.negf %18 : vector<8x128xf32>
    %20 = math.exp %19 : vector<8x128xf32>
    %cst_10 = arith.constant 1.000000e+00 : f32
    %21 = vector.broadcast %cst_10 : f32 to vector<8x128xf32>
    %22 = arith.addf %21, %20 : vector<8x128xf32>
    %23 = arith.divf %21, %22 : vector<8x128xf32>
    %24 = vector.extract_strided_slice %11 {offsets = [0, 256], sizes = [8, 128], strides = [1, 1]} : vector<8x512xf32> to vector<8x128xf32>
    %25 = math.tanh %24 : vector<8x128xf32>
    %26 = vector.extract_strided_slice %11 {offsets = [0, 384], sizes = [8, 128], strides = [1, 1]} : vector<8x512xf32> to vector<8x128xf32>
    %27 = arith.negf %26 : vector<8x128xf32>
    %28 = math.exp %27 : vector<8x128xf32>
    %cst_11 = arith.constant 1.000000e+00 : f32
    %29 = vector.broadcast %cst_11 : f32 to vector<8x128xf32>
    %30 = arith.addf %29, %28 : vector<8x128xf32>
    %31 = arith.divf %29, %30 : vector<8x128xf32>
    %32 = arith.mulf %23, %4 : vector<8x128xf32>
    %33 = arith.mulf %17, %25 : vector<8x128xf32>
    %34 = arith.addf %32, %33 : vector<8x128xf32>
    %35 = math.tanh %34 : vector<8x128xf32>
    %36 = arith.mulf %31, %35 : vector<8x128xf32>
    %c1_i32 = arith.constant 1 : i32
    %37 = arith.index_cast %c1_i32 : i32 to index
    %c0_12 = arith.constant 0 : index
    %c0_13 = arith.constant 0 : index
    %38 = vector.load %arg2[%37, %c0_12, %c0_13] : memref<8x8x512xf32, #tpu.memory_space<vmem>>, vector<1x8x512xf32>
    %39 = vector.shape_cast %38 : vector<1x8x512xf32> to vector<8x512xf32>
    %40 = arith.truncf %36 : vector<8x128xf32> to vector<8x128xbf16>
    %c0_14 = arith.constant 0 : index
    %c0_15 = arith.constant 0 : index
    %41 = vector.load %arg3[%c0_14, %c0_15] : memref<128x512xbf16, #tpu.memory_space<vmem>>, vector<128x512xbf16>
    %cst_16 = arith.constant dense<0.000000e+00> : vector<8x512xf32>
    %42 = tpu.matmul %40, %41, %cst_16 {dimension_numbers = #tpu.dot_dimension_numbers<[1], [0], [0], [1], [0, 0, 1, 1], [], []>} : vector<8x128xbf16>, vector<128x512xbf16>, vector<8x512xf32> -> vector<8x512xf32>
    %43 = arith.addf %39, %42 : vector<8x512xf32>
    %44 = vector.extract_strided_slice %43 {offsets = [0, 0], sizes = [8, 128], strides = [1, 1]} : vector<8x512xf32> to vector<8x128xf32>
    %45 = arith.negf %44 : vector<8x128xf32>
    %46 = math.exp %45 : vector<8x128xf32>
    %cst_17 = arith.constant 1.000000e+00 : f32
    %47 = vector.broadcast %cst_17 : f32 to vector<8x128xf32>
    %48 = arith.addf %47, %46 : vector<8x128xf32>
    %49 = arith.divf %47, %48 : vector<8x128xf32>
    %50 = vector.extract_strided_slice %43 {offsets = [0, 128], sizes = [8, 128], strides = [1, 1]} : vector<8x512xf32> to vector<8x128xf32>
    %51 = arith.negf %50 : vector<8x128xf32>
    %52 = math.exp %51 : vector<8x128xf32>
    %cst_18 = arith.constant 1.000000e+00 : f32
    %53 = vector.broadcast %cst_18 : f32 to vector<8x128xf32>
    %54 = arith.addf %53, %52 : vector<8x128xf32>
    %55 = arith.divf %53, %54 : vector<8x128xf32>
    %56 = vector.extract_strided_slice %43 {offsets = [0, 256], sizes = [8, 128], strides = [1, 1]} : vector<8x512xf32> to vector<8x128xf32>
    %57 = math.tanh %56 : vector<8x128xf32>
    %58 = vector.extract_strided_slice %43 {offsets = [0, 384], sizes = [8, 128], strides = [1, 1]} : vector<8x512xf32> to vector<8x128xf32>
    %59 = arith.negf %58 : vector<8x128xf32>
    %60 = math.exp %59 : vector<8x128xf32>
    %cst_19 = arith.constant 1.000000e+00 : f32
    %61 = vector.broadcast %cst_19 : f32 to vector<8x128xf32>
    %62 = arith.addf %61, %60 : vector<8x128xf32>
    %63 = arith.divf %61, %62 : vector<8x128xf32>
    %64 = arith.mulf %55, %34 : vector<8x128xf32>
    %65 = arith.mulf %49, %57 : vector<8x128xf32>
    %66 = arith.addf %64, %65 : vector<8x128xf32>
    %67 = math.tanh %66 : vector<8x128xf32>
    %68 = arith.mulf %63, %67 : vector<8x128xf32>
    %c2_i32 = arith.constant 2 : i32
    %69 = arith.index_cast %c2_i32 : i32 to index
    %c0_20 = arith.constant 0 : index
    %c0_21 = arith.constant 0 : index
    %70 = vector.load %arg2[%69, %c0_20, %c0_21] : memref<8x8x512xf32, #tpu.memory_space<vmem>>, vector<1x8x512xf32>
    %71 = vector.shape_cast %70 : vector<1x8x512xf32> to vector<8x512xf32>
    %72 = arith.truncf %68 : vector<8x128xf32> to vector<8x128xbf16>
    %c0_22 = arith.constant 0 : index
    %c0_23 = arith.constant 0 : index
    %73 = vector.load %arg3[%c0_22, %c0_23] : memref<128x512xbf16, #tpu.memory_space<vmem>>, vector<128x512xbf16>
    %cst_24 = arith.constant dense<0.000000e+00> : vector<8x512xf32>
    %74 = tpu.matmul %72, %73, %cst_24 {dimension_numbers = #tpu.dot_dimension_numbers<[1], [0], [0], [1], [0, 0, 1, 1], [], []>} : vector<8x128xbf16>, vector<128x512xbf16>, vector<8x512xf32> -> vector<8x512xf32>
    %75 = arith.addf %71, %74 : vector<8x512xf32>
    %76 = vector.extract_strided_slice %75 {offsets = [0, 0], sizes = [8, 128], strides = [1, 1]} : vector<8x512xf32> to vector<8x128xf32>
    %77 = arith.negf %76 : vector<8x128xf32>
    %78 = math.exp %77 : vector<8x128xf32>
    %cst_25 = arith.constant 1.000000e+00 : f32
    %79 = vector.broadcast %cst_25 : f32 to vector<8x128xf32>
    %80 = arith.addf %79, %78 : vector<8x128xf32>
    %81 = arith.divf %79, %80 : vector<8x128xf32>
    %82 = vector.extract_strided_slice %75 {offsets = [0, 128], sizes = [8, 128], strides = [1, 1]} : vector<8x512xf32> to vector<8x128xf32>
    %83 = arith.negf %82 : vector<8x128xf32>
    %84 = math.exp %83 : vector<8x128xf32>
    %cst_26 = arith.constant 1.000000e+00 : f32
    %85 = vector.broadcast %cst_26 : f32 to vector<8x128xf32>
    %86 = arith.addf %85, %84 : vector<8x128xf32>
    %87 = arith.divf %85, %86 : vector<8x128xf32>
    %88 = vector.extract_strided_slice %75 {offsets = [0, 256], sizes = [8, 128], strides = [1, 1]} : vector<8x512xf32> to vector<8x128xf32>
    %89 = math.tanh %88 : vector<8x128xf32>
    %90 = vector.extract_strided_slice %75 {offsets = [0, 384], sizes = [8, 128], strides = [1, 1]} : vector<8x512xf32> to vector<8x128xf32>
    %91 = arith.negf %90 : vector<8x128xf32>
    %92 = math.exp %91 : vector<8x128xf32>
    %cst_27 = arith.constant 1.000000e+00 : f32
    %93 = vector.broadcast %cst_27 : f32 to vector<8x128xf32>
    %94 = arith.addf %93, %92 : vector<8x128xf32>
    %95 = arith.divf %93, %94 : vector<8x128xf32>
    %96 = arith.mulf %87, %66 : vector<8x128xf32>
    %97 = arith.mulf %81, %89 : vector<8x128xf32>
    %98 = arith.addf %96, %97 : vector<8x128xf32>
    %99 = math.tanh %98 : vector<8x128xf32>
    %100 = arith.mulf %95, %99 : vector<8x128xf32>
    %c3_i32 = arith.constant 3 : i32
    %101 = arith.index_cast %c3_i32 : i32 to index
    %c0_28 = arith.constant 0 : index
    %c0_29 = arith.constant 0 : index
    %102 = vector.load %arg2[%101, %c0_28, %c0_29] : memref<8x8x512xf32, #tpu.memory_space<vmem>>, vector<1x8x512xf32>
    %103 = vector.shape_cast %102 : vector<1x8x512xf32> to vector<8x512xf32>
    %104 = arith.truncf %100 : vector<8x128xf32> to vector<8x128xbf16>
    %c0_30 = arith.constant 0 : index
    %c0_31 = arith.constant 0 : index
    %105 = vector.load %arg3[%c0_30, %c0_31] : memref<128x512xbf16, #tpu.memory_space<vmem>>, vector<128x512xbf16>
    %cst_32 = arith.constant dense<0.000000e+00> : vector<8x512xf32>
    %106 = tpu.matmul %104, %105, %cst_32 {dimension_numbers = #tpu.dot_dimension_numbers<[1], [0], [0], [1], [0, 0, 1, 1], [], []>} : vector<8x128xbf16>, vector<128x512xbf16>, vector<8x512xf32> -> vector<8x512xf32>
    %107 = arith.addf %103, %106 : vector<8x512xf32>
    %108 = vector.extract_strided_slice %107 {offsets = [0, 0], sizes = [8, 128], strides = [1, 1]} : vector<8x512xf32> to vector<8x128xf32>
    %109 = arith.negf %108 : vector<8x128xf32>
    %110 = math.exp %109 : vector<8x128xf32>
    %cst_33 = arith.constant 1.000000e+00 : f32
    %111 = vector.broadcast %cst_33 : f32 to vector<8x128xf32>
    %112 = arith.addf %111, %110 : vector<8x128xf32>
    %113 = arith.divf %111, %112 : vector<8x128xf32>
    %114 = vector.extract_strided_slice %107 {offsets = [0, 128], sizes = [8, 128], strides = [1, 1]} : vector<8x512xf32> to vector<8x128xf32>
    %115 = arith.negf %114 : vector<8x128xf32>
    %116 = math.exp %115 : vector<8x128xf32>
    %cst_34 = arith.constant 1.000000e+00 : f32
    %117 = vector.broadcast %cst_34 : f32 to vector<8x128xf32>
    %118 = arith.addf %117, %116 : vector<8x128xf32>
    %119 = arith.divf %117, %118 : vector<8x128xf32>
    %120 = vector.extract_strided_slice %107 {offsets = [0, 256], sizes = [8, 128], strides = [1, 1]} : vector<8x512xf32> to vector<8x128xf32>
    %121 = math.tanh %120 : vector<8x128xf32>
    %122 = vector.extract_strided_slice %107 {offsets = [0, 384], sizes = [8, 128], strides = [1, 1]} : vector<8x512xf32> to vector<8x128xf32>
    %123 = arith.negf %122 : vector<8x128xf32>
    %124 = math.exp %123 : vector<8x128xf32>
    %cst_35 = arith.constant 1.000000e+00 : f32
    %125 = vector.broadcast %cst_35 : f32 to vector<8x128xf32>
    %126 = arith.addf %125, %124 : vector<8x128xf32>
    %127 = arith.divf %125, %126 : vector<8x128xf32>
    %128 = arith.mulf %119, %98 : vector<8x128xf32>
    %129 = arith.mulf %113, %121 : vector<8x128xf32>
    %130 = arith.addf %128, %129 : vector<8x128xf32>
    %131 = math.tanh %130 : vector<8x128xf32>
    %132 = arith.mulf %127, %131 : vector<8x128xf32>
    %c4_i32 = arith.constant 4 : i32
    %133 = arith.index_cast %c4_i32 : i32 to index
    %c0_36 = arith.constant 0 : index
    %c0_37 = arith.constant 0 : index
    %134 = vector.load %arg2[%133, %c0_36, %c0_37] : memref<8x8x512xf32, #tpu.memory_space<vmem>>, vector<1x8x512xf32>
    %135 = vector.shape_cast %134 : vector<1x8x512xf32> to vector<8x512xf32>
    %136 = arith.truncf %132 : vector<8x128xf32> to vector<8x128xbf16>
    %c0_38 = arith.constant 0 : index
    %c0_39 = arith.constant 0 : index
    %137 = vector.load %arg3[%c0_38, %c0_39] : memref<128x512xbf16, #tpu.memory_space<vmem>>, vector<128x512xbf16>
    %cst_40 = arith.constant dense<0.000000e+00> : vector<8x512xf32>
    %138 = tpu.matmul %136, %137, %cst_40 {dimension_numbers = #tpu.dot_dimension_numbers<[1], [0], [0], [1], [0, 0, 1, 1], [], []>} : vector<8x128xbf16>, vector<128x512xbf16>, vector<8x512xf32> -> vector<8x512xf32>
    %139 = arith.addf %135, %138 : vector<8x512xf32>
    %140 = vector.extract_strided_slice %139 {offsets = [0, 0], sizes = [8, 128], strides = [1, 1]} : vector<8x512xf32> to vector<8x128xf32>
    %141 = arith.negf %140 : vector<8x128xf32>
    %142 = math.exp %141 : vector<8x128xf32>
    %cst_41 = arith.constant 1.000000e+00 : f32
    %143 = vector.broadcast %cst_41 : f32 to vector<8x128xf32>
    %144 = arith.addf %143, %142 : vector<8x128xf32>
    %145 = arith.divf %143, %144 : vector<8x128xf32>
    %146 = vector.extract_strided_slice %139 {offsets = [0, 128], sizes = [8, 128], strides = [1, 1]} : vector<8x512xf32> to vector<8x128xf32>
    %147 = arith.negf %146 : vector<8x128xf32>
    %148 = math.exp %147 : vector<8x128xf32>
    %cst_42 = arith.constant 1.000000e+00 : f32
    %149 = vector.broadcast %cst_42 : f32 to vector<8x128xf32>
    %150 = arith.addf %149, %148 : vector<8x128xf32>
    %151 = arith.divf %149, %150 : vector<8x128xf32>
    %152 = vector.extract_strided_slice %139 {offsets = [0, 256], sizes = [8, 128], strides = [1, 1]} : vector<8x512xf32> to vector<8x128xf32>
    %153 = math.tanh %152 : vector<8x128xf32>
    %154 = vector.extract_strided_slice %139 {offsets = [0, 384], sizes = [8, 128], strides = [1, 1]} : vector<8x512xf32> to vector<8x128xf32>
    %155 = arith.negf %154 : vector<8x128xf32>
    %156 = math.exp %155 : vector<8x128xf32>
    %cst_43 = arith.constant 1.000000e+00 : f32
    %157 = vector.broadcast %cst_43 : f32 to vector<8x128xf32>
    %158 = arith.addf %157, %156 : vector<8x128xf32>
    %159 = arith.divf %157, %158 : vector<8x128xf32>
    %160 = arith.mulf %151, %130 : vector<8x128xf32>
    %161 = arith.mulf %145, %153 : vector<8x128xf32>
    %162 = arith.addf %160, %161 : vector<8x128xf32>
    %163 = math.tanh %162 : vector<8x128xf32>
    %164 = arith.mulf %159, %163 : vector<8x128xf32>
    %c5_i32 = arith.constant 5 : i32
    %165 = arith.index_cast %c5_i32 : i32 to index
    %c0_44 = arith.constant 0 : index
    %c0_45 = arith.constant 0 : index
    %166 = vector.load %arg2[%165, %c0_44, %c0_45] : memref<8x8x512xf32, #tpu.memory_space<vmem>>, vector<1x8x512xf32>
    %167 = vector.shape_cast %166 : vector<1x8x512xf32> to vector<8x512xf32>
    %168 = arith.truncf %164 : vector<8x128xf32> to vector<8x128xbf16>
    %c0_46 = arith.constant 0 : index
    %c0_47 = arith.constant 0 : index
    %169 = vector.load %arg3[%c0_46, %c0_47] : memref<128x512xbf16, #tpu.memory_space<vmem>>, vector<128x512xbf16>
    %cst_48 = arith.constant dense<0.000000e+00> : vector<8x512xf32>
    %170 = tpu.matmul %168, %169, %cst_48 {dimension_numbers = #tpu.dot_dimension_numbers<[1], [0], [0], [1], [0, 0, 1, 1], [], []>} : vector<8x128xbf16>, vector<128x512xbf16>, vector<8x512xf32> -> vector<8x512xf32>
    %171 = arith.addf %167, %170 : vector<8x512xf32>
    %172 = vector.extract_strided_slice %171 {offsets = [0, 0], sizes = [8, 128], strides = [1, 1]} : vector<8x512xf32> to vector<8x128xf32>
    %173 = arith.negf %172 : vector<8x128xf32>
    %174 = math.exp %173 : vector<8x128xf32>
    %cst_49 = arith.constant 1.000000e+00 : f32
    %175 = vector.broadcast %cst_49 : f32 to vector<8x128xf32>
    %176 = arith.addf %175, %174 : vector<8x128xf32>
    %177 = arith.divf %175, %176 : vector<8x128xf32>
    %178 = vector.extract_strided_slice %171 {offsets = [0, 128], sizes = [8, 128], strides = [1, 1]} : vector<8x512xf32> to vector<8x128xf32>
    %179 = arith.negf %178 : vector<8x128xf32>
    %180 = math.exp %179 : vector<8x128xf32>
    %cst_50 = arith.constant 1.000000e+00 : f32
    %181 = vector.broadcast %cst_50 : f32 to vector<8x128xf32>
    %182 = arith.addf %181, %180 : vector<8x128xf32>
    %183 = arith.divf %181, %182 : vector<8x128xf32>
    %184 = vector.extract_strided_slice %171 {offsets = [0, 256], sizes = [8, 128], strides = [1, 1]} : vector<8x512xf32> to vector<8x128xf32>
    %185 = math.tanh %184 : vector<8x128xf32>
    %186 = vector.extract_strided_slice %171 {offsets = [0, 384], sizes = [8, 128], strides = [1, 1]} : vector<8x512xf32> to vector<8x128xf32>
    %187 = arith.negf %186 : vector<8x128xf32>
    %188 = math.exp %187 : vector<8x128xf32>
    %cst_51 = arith.constant 1.000000e+00 : f32
    %189 = vector.broadcast %cst_51 : f32 to vector<8x128xf32>
    %190 = arith.addf %189, %188 : vector<8x128xf32>
    %191 = arith.divf %189, %190 : vector<8x128xf32>
    %192 = arith.mulf %183, %162 : vector<8x128xf32>
    %193 = arith.mulf %177, %185 : vector<8x128xf32>
    %194 = arith.addf %192, %193 : vector<8x128xf32>
    %195 = math.tanh %194 : vector<8x128xf32>
    %196 = arith.mulf %191, %195 : vector<8x128xf32>
    %c6_i32 = arith.constant 6 : i32
    %197 = arith.index_cast %c6_i32 : i32 to index
    %c0_52 = arith.constant 0 : index
    %c0_53 = arith.constant 0 : index
    %198 = vector.load %arg2[%197, %c0_52, %c0_53] : memref<8x8x512xf32, #tpu.memory_space<vmem>>, vector<1x8x512xf32>
    %199 = vector.shape_cast %198 : vector<1x8x512xf32> to vector<8x512xf32>
    %200 = arith.truncf %196 : vector<8x128xf32> to vector<8x128xbf16>
    %c0_54 = arith.constant 0 : index
    %c0_55 = arith.constant 0 : index
    %201 = vector.load %arg3[%c0_54, %c0_55] : memref<128x512xbf16, #tpu.memory_space<vmem>>, vector<128x512xbf16>
    %cst_56 = arith.constant dense<0.000000e+00> : vector<8x512xf32>
    %202 = tpu.matmul %200, %201, %cst_56 {dimension_numbers = #tpu.dot_dimension_numbers<[1], [0], [0], [1], [0, 0, 1, 1], [], []>} : vector<8x128xbf16>, vector<128x512xbf16>, vector<8x512xf32> -> vector<8x512xf32>
    %203 = arith.addf %199, %202 : vector<8x512xf32>
    %204 = vector.extract_strided_slice %203 {offsets = [0, 0], sizes = [8, 128], strides = [1, 1]} : vector<8x512xf32> to vector<8x128xf32>
    %205 = arith.negf %204 : vector<8x128xf32>
    %206 = math.exp %205 : vector<8x128xf32>
    %cst_57 = arith.constant 1.000000e+00 : f32
    %207 = vector.broadcast %cst_57 : f32 to vector<8x128xf32>
    %208 = arith.addf %207, %206 : vector<8x128xf32>
    %209 = arith.divf %207, %208 : vector<8x128xf32>
    %210 = vector.extract_strided_slice %203 {offsets = [0, 128], sizes = [8, 128], strides = [1, 1]} : vector<8x512xf32> to vector<8x128xf32>
    %211 = arith.negf %210 : vector<8x128xf32>
    %212 = math.exp %211 : vector<8x128xf32>
    %cst_58 = arith.constant 1.000000e+00 : f32
    %213 = vector.broadcast %cst_58 : f32 to vector<8x128xf32>
    %214 = arith.addf %213, %212 : vector<8x128xf32>
    %215 = arith.divf %213, %214 : vector<8x128xf32>
    %216 = vector.extract_strided_slice %203 {offsets = [0, 256], sizes = [8, 128], strides = [1, 1]} : vector<8x512xf32> to vector<8x128xf32>
    %217 = math.tanh %216 : vector<8x128xf32>
    %218 = vector.extract_strided_slice %203 {offsets = [0, 384], sizes = [8, 128], strides = [1, 1]} : vector<8x512xf32> to vector<8x128xf32>
    %219 = arith.negf %218 : vector<8x128xf32>
    %220 = math.exp %219 : vector<8x128xf32>
    %cst_59 = arith.constant 1.000000e+00 : f32
    %221 = vector.broadcast %cst_59 : f32 to vector<8x128xf32>
    %222 = arith.addf %221, %220 : vector<8x128xf32>
    %223 = arith.divf %221, %222 : vector<8x128xf32>
    %224 = arith.mulf %215, %194 : vector<8x128xf32>
    %225 = arith.mulf %209, %217 : vector<8x128xf32>
    %226 = arith.addf %224, %225 : vector<8x128xf32>
    %227 = math.tanh %226 : vector<8x128xf32>
    %228 = arith.mulf %223, %227 : vector<8x128xf32>
    %c7_i32 = arith.constant 7 : i32
    %229 = arith.index_cast %c7_i32 : i32 to index
    %c0_60 = arith.constant 0 : index
    %c0_61 = arith.constant 0 : index
    %230 = vector.load %arg2[%229, %c0_60, %c0_61] : memref<8x8x512xf32, #tpu.memory_space<vmem>>, vector<1x8x512xf32>
    %231 = vector.shape_cast %230 : vector<1x8x512xf32> to vector<8x512xf32>
    %232 = arith.truncf %228 : vector<8x128xf32> to vector<8x128xbf16>
    %c0_62 = arith.constant 0 : index
    %c0_63 = arith.constant 0 : index
    %233 = vector.load %arg3[%c0_62, %c0_63] : memref<128x512xbf16, #tpu.memory_space<vmem>>, vector<128x512xbf16>
    %cst_64 = arith.constant dense<0.000000e+00> : vector<8x512xf32>
    %234 = tpu.matmul %232, %233, %cst_64 {dimension_numbers = #tpu.dot_dimension_numbers<[1], [0], [0], [1], [0, 0, 1, 1], [], []>} : vector<8x128xbf16>, vector<128x512xbf16>, vector<8x512xf32> -> vector<8x512xf32>
    %235 = arith.addf %231, %234 : vector<8x512xf32>
    %236 = vector.extract_strided_slice %235 {offsets = [0, 0], sizes = [8, 128], strides = [1, 1]} : vector<8x512xf32> to vector<8x128xf32>
    %237 = arith.negf %236 : vector<8x128xf32>
    %238 = math.exp %237 : vector<8x128xf32>
    %cst_65 = arith.constant 1.000000e+00 : f32
    %239 = vector.broadcast %cst_65 : f32 to vector<8x128xf32>
    %240 = arith.addf %239, %238 : vector<8x128xf32>
    %241 = arith.divf %239, %240 : vector<8x128xf32>
    %242 = vector.extract_strided_slice %235 {offsets = [0, 128], sizes = [8, 128], strides = [1, 1]} : vector<8x512xf32> to vector<8x128xf32>
    %243 = arith.negf %242 : vector<8x128xf32>
    %244 = math.exp %243 : vector<8x128xf32>
    %cst_66 = arith.constant 1.000000e+00 : f32
    %245 = vector.broadcast %cst_66 : f32 to vector<8x128xf32>
    %246 = arith.addf %245, %244 : vector<8x128xf32>
    %247 = arith.divf %245, %246 : vector<8x128xf32>
    %248 = vector.extract_strided_slice %235 {offsets = [0, 256], sizes = [8, 128], strides = [1, 1]} : vector<8x512xf32> to vector<8x128xf32>
    %249 = math.tanh %248 : vector<8x128xf32>
    %250 = vector.extract_strided_slice %235 {offsets = [0, 384], sizes = [8, 128], strides = [1, 1]} : vector<8x512xf32> to vector<8x128xf32>
    %251 = arith.negf %250 : vector<8x128xf32>
    %252 = math.exp %251 : vector<8x128xf32>
    %cst_67 = arith.constant 1.000000e+00 : f32
    %253 = vector.broadcast %cst_67 : f32 to vector<8x128xf32>
    %254 = arith.addf %253, %252 : vector<8x128xf32>
    %255 = arith.divf %253, %254 : vector<8x128xf32>
    %256 = arith.mulf %247, %226 : vector<8x128xf32>
    %257 = arith.mulf %241, %249 : vector<8x128xf32>
    %258 = arith.addf %256, %257 : vector<8x128xf32>
    %259 = math.tanh %258 : vector<8x128xf32>
    %260 = arith.mulf %255, %259 : vector<8x128xf32>
    %c8_i32 = arith.constant 8 : i32
    %c0_68 = arith.constant 0 : index
    %c0_69 = arith.constant 0 : index
    %261 = vector.load %arg5[%c0_68, %c0_69] : memref<8x128xf32, #tpu.memory_space<vmem>>, vector<8x128xf32>
    tpu.vector_store %arg5[%c0_68, %c0_69], %260 {strides = array<i32>} : memref<8x128xf32, #tpu.memory_space<vmem>>, vector<8x128xf32>,
    %c0_70 = arith.constant 0 : index
    %c0_71 = arith.constant 0 : index
    %262 = vector.load %arg6[%c0_70, %c0_71] : memref<8x128xf32, #tpu.memory_space<vmem>>, vector<8x128xf32>
    tpu.vector_store %arg6[%c0_70, %c0_71], %258 {strides = array<i32>} : memref<8x128xf32, #tpu.memory_space<vmem>>, vector<8x128xf32>,
    %c0_i32_72 = arith.constant 0 : i32
    %263 = arith.cmpi eq, %arg1, %c0_i32_72 : i32
    %264 = arith.extui %263 : i1 to i32
    %c0_i32_73 = arith.constant 0 : i32
    %265 = arith.cmpi ne, %264, %c0_i32_73 : i32
    scf.if %265 {
      %c0_74 = arith.constant 0 : index
      %c0_75 = arith.constant 0 : index
      %266 = vector.load %arg4[%c0_74, %c0_75] : memref<8x128xf32, #tpu.memory_space<vmem>>, vector<8x128xf32>
      tpu.vector_store %arg4[%c0_74, %c0_75], %260 {strides = array<i32>} : memref<8x128xf32, #tpu.memory_space<vmem>>, vector<8x128xf32>,
    } else {
    }
    return
  }
  func.func @transform_0(%arg0: i32, %arg1: i32) -> (i32, i32, i32) {
    %c0_i32 = arith.constant 0 : i32
    %c0_i32_0 = arith.constant 0 : i32
    return %arg1, %arg0, %c0_i32 : i32, i32, i32
  }
  func.func @transform_1(%arg0: i32, %arg1: i32) -> (i32, i32) {
    %c0_i32 = arith.constant 0 : i32
    %c0_i32_0 = arith.constant 0 : i32
    %c0_i32_1 = arith.constant 0 : i32
    return %c0_i32, %c0_i32_0 : i32, i32
  }
  func.func @transform_2(%arg0: i32, %arg1: i32) -> (i32, i32) {
    %c0_i32 = arith.constant 0 : i32
    %c0_i32_0 = arith.constant 0 : i32
    return %arg0, %c0_i32 : i32, i32
  }
}

</mosaic_0001>

<bundles_post_ra>
// kernel: tpu_custom_call.1
= control target key start
LH: loop header
LB: loop body
LE: loop exit
PB: predicated region body
PF: predicated region fallthrough
CT: control target
= control target key end

     0   :  { %7 = vsyncpa [#allocation5], 0  ;;  %s1890_s0 = inlined_call_operand.hbm [shape: f32[8,8,512], index: 0, kind: input, shape index: {}]   ;;  %s1891_s1 = inlined_call_operand.hbm [shape: bf16[128,512], index: 1, kind: input, shape index: {}]   ;;  %s1892_s2 = inlined_call_operand.hbm [shape: f32[8,128], index: 2, kind: output, shape index: {}]  }
   0x1   :  { %8 = vsyncpa [#allocation8], 0 }
   0x2   :  { %9 = vsyncpa [#allocation6], 0  ;;  %s1528_s9 = smov [#allocation4]  }
   0x3   :  { %s15_s10 = sshll.u32 %s1528_s9, 4  ;;  %s16_s10 = int_to_ptr.vmem [resolvable:$true] %s15_s10 }
   0x4   :  { %s1470_s11 = scalar_lea.vmem %s16_s10, 4096  ;;  %p1475_p1 = scmp.lt.s32.totalorder %s16_s10, %s16_s10 }
   0x5   :  { %p1471_p0 = scmp.ne.s32.totalorder %s16_s10, %s1470_s11  ;;  %p1476_p2 = scmp.lt.s32.totalorder %s1470_s11, %s1470_s11 }
   0x7   :  { %p1477_p3 = por %p1476_p2, %p1475_p1 }
   0x9   :  { %p1478_p4 = pnand %p1477_p3, %p1471_p0 }
   0xb   :  { %1481 = shalt.err (!%p1478_p4)
}
   0xc   :  { %s1529_s12 = smov 512   ;;  %s1530_s13 = smov 32  }
   0xd   :  { %21 = dma.hbm_to_vmem [thread:$0]  %s1890_s0, 4096, %s16_s10, [#allocation5], %s1529_s12, %s1529_s12, %s1530_s13  }
   0xe   :  { %s1531_s16 = smov [#allocation7]  }
   0xf   :  { %s27_s17 = sshll.u32 %s1531_s16, 4  ;;  %s28_s17 = int_to_ptr.vmem [resolvable:$true] %s27_s17 }
  0x10   :  { %s1490_s18 = scalar_lea.vmem %s28_s17, 4096  ;;  %p1495_p6 = scmp.lt.s32.totalorder %s28_s17, %s28_s17 }
  0x11   :  { %p1491_p5 = scmp.ne.s32.totalorder %s28_s17, %s1490_s18  ;;  %p1496_p7 = scmp.lt.s32.totalorder %s1490_s18, %s1490_s18 }
  0x13   :  { %p1497_p8 = por %p1496_p7, %p1495_p6 }
  0x15   :  { %p1498_p9 = pnand %p1497_p8, %p1491_p5 }
  0x17   :  { %1501 = shalt.err (!%p1498_p9)
}
  0x18   :  { %s1532_s19 = smov 256   ;;  %s1533_s20 = smov 16  }
  0x19   :  { %33 = dma.hbm_to_vmem [thread:$0]  %s1891_s1, 4096, %s28_s17, [#allocation8], %s1532_s19, %s1532_s19, %s1533_s20  }
  0x1a   :  { %1522 = dma.done.wait [#allocation5], 4096  }
  0x1b   :  { %1523 = vsyncadd [#allocation5], 4294963200 }
  0x1c   :  { %1524 = dma.done.wait [#allocation8], 4096  }
  0x1d   :  { %1525 = vsyncadd [#allocation8], 4294963200  ;;  %v1534_v0 = vmov 0   ;;  %v1560_v1 = vld [vmem:[#allocation7 + $0xe4] ss:$16 sps:$4 sm:$0xff]   ;;  %v1535_v33 = vmov 0.0|0.0  }
  0x1e   :  { %278 = vmatprep.mubr.bf16.mxu0 %v1534_v0  ;;  %319 = vmatprep.mubr.bf16.mxu1 %v1534_v0  ;;  %v1562_v2 = vld [vmem:[#allocation7 + $0xe0] ss:$16 sps:$4 sm:$0xff]   ;;  %v1565_v3 = vld [vmem:[#allocation7 + $0xc4] ss:$16 sps:$4 sm:$0xff]   ;;  %v1573_v6 = vld [vmem:[#allocation7 + $0xec] ss:$16 sps:$4 sm:$0xff]  }
  0x1f   :  { %246 = vmatprep.subr.bf16.mxu0 %v1560_v1  ;;  %v1568_v4 = vld [vmem:[#allocation7 + $0xc0] ss:$16 sps:$4 sm:$0xff]   ;;  %v1571_v5 = vld [vmem:[#allocation7 + $0xa4] ss:$16 sps:$4 sm:$0xff]   ;;  %v1575_v7 = vld [vmem:[#allocation7 + $0xe8] ss:$16 sps:$4 sm:$0xff]   ;;  %287 = vmatprep.subr.bf16.mxu1 %v1573_v6 }
  0x20   :  { %247 = vmatpush1.bf16.msra.mxu0 %v1562_v2  ;;  %v1578_v8 = vld [vmem:[#allocation7 + $0xa0] ss:$16 sps:$4 sm:$0xff]   ;;  %v1582_v9 = vld [vmem:[#allocation7 + $0x84] ss:$16 sps:$4 sm:$0xff]   ;;  %288 = vmatpush1.bf16.msra.mxu1 %v1575_v7  ;;  %v1585_v10 = vld [vmem:[#allocation7 + $0xcc] ss:$16 sps:$4 sm:$0xff]  }
  0x21   :  { %248 = vmatprep.subr.bf16.mxu0 %v1565_v3  ;;  %v1587_v11 = vld [vmem:[#allocation7 + $0xc8] ss:$16 sps:$4 sm:$0xff]   ;;  %289 = vmatprep.subr.bf16.mxu1 %v1585_v10  ;;  %v1591_v12 = vld [vmem:[#allocation7 + $0x80] ss:$16 sps:$4 sm:$0xff]   ;;  %v1593_v13 = vld [vmem:[#allocation7 + $0x64] ss:$16 sps:$4 sm:$0xff]  }
  0x22   :  { %v1595_v14 = vld [vmem:[#allocation7 + $0xac] ss:$16 sps:$4 sm:$0xff]   ;;  %v1599_v15 = vld [vmem:[#allocation7 + $0xa8] ss:$16 sps:$4 sm:$0xff]   ;;  %v1605_v17 = vld [vmem:[#allocation7 + $0x60] ss:$16 sps:$4 sm:$0xff]  }
  0x23   :  { %v1602_v16 = vld [vmem:[#allocation7 + $0x8c] ss:$16 sps:$4 sm:$0xff]   ;;  %v1608_v18 = vld [vmem:[#allocation7 + $0x44] ss:$16 sps:$4 sm:$0xff]   ;;  %v1611_v19 = vld [vmem:[#allocation7 + $0x88] ss:$16 sps:$4 sm:$0xff]  }
  0x24   :  { %249 = vmatpush1.bf16.msra.mxu0 %v1568_v4  ;;  %290 = vmatpush1.bf16.msra.mxu1 %v1587_v11  ;;  %v1614_v20 = vld [vmem:[#allocation7 + $0x6c] ss:$16 sps:$4 sm:$0xff]   ;;  %v1617_v21 = vld [vmem:[#allocation7 + $0x40] ss:$16 sps:$4 sm:$0xff]   ;;  %v1619_v22 = vld [vmem:[#allocation7 + $0x24] ss:$16 sps:$4 sm:$0xff]  }
  0x25   :  { %250 = vmatprep.subr.bf16.mxu0 %v1571_v5  ;;  %291 = vmatprep.subr.bf16.mxu1 %v1595_v14  ;;  %v1623_v23 = vld [vmem:[#allocation7 + $0x68] ss:$16 sps:$4 sm:$0xff]   ;;  %v1626_v24 = vld [vmem:[#allocation7 + $0x4c] ss:$16 sps:$4 sm:$0xff]   ;;  %v1629_v25 = vld [vmem:[#allocation7 + $0x20] ss:$16 sps:$4 sm:$0xff]  }
  0x26   :  { %v1632_v26 = vld [vmem:[#allocation7 + $0x4] ss:$16 sps:$4 sm:$0xff]   ;;  %v1635_v27 = vld [vmem:[#allocation7 + $0x48] ss:$16 sps:$4 sm:$0xff]   ;;  %v1638_v28 = vld [vmem:[#allocation7 + $0x2c] ss:$16 sps:$4 sm:$0xff]  }
  0x27   :  { %v1641_v29 = vld [vmem:[#allocation7] ss:$16 sps:$4 sm:$0xff]   ;;  %v1645_v30 = vld [vmem:[#allocation7 + $0x28] ss:$16 sps:$4 sm:$0xff]   ;;  %v1648_v31 = vld [vmem:[#allocation7 + $0xc] ss:$16 sps:$4 sm:$0xff]  }
  0x28   :  { %251 = vmatpush1.bf16.msra.mxu0 %v1578_v8  ;;  %292 = vmatpush1.bf16.msra.mxu1 %v1599_v15  ;;  %v1652_v32 = vld [vmem:[#allocation7 + $0x8] ss:$16 sps:$4 sm:$0xff]   ;;  %v49_v34 = vld [vmem:[#allocation4] sm:$0xff]  ;;  %v51_v49 = vld [vmem:[#allocation4 + $0x10] sm:$0xff]  ;;  %s1536_s0 = smov [#allocation9]  }
  0x29   :  { %252 = vmatprep.subr.bf16.mxu0 %v1582_v9  ;;  %293 = vmatprep.subr.bf16.mxu1 %v1602_v16  ;;  %v50_v36 = vld [vmem:[#allocation4 + $0x8] sm:$0xff]  ;;  %v52_v46 = vld [vmem:[#allocation4 + $0x18] sm:$0xff]  ;;  %s1180_s1 = sshll.u32 %s1536_s0, 4  ;;  %s1181_s1 = int_to_ptr.vmem [resolvable:$true] %s1180_s1 }
  0x2a   :  { %s1502_s23 = scalar_lea.vmem %s1181_s1, 128  ;;  %p1507_p11 = scmp.lt.s32.totalorder %s1181_s1, %s1181_s1 }
  0x2b   :  { %p1503_p10 = scmp.ne.s32.totalorder %s1181_s1, %s1502_s23  ;;  %p1508_p12 = scmp.lt.s32.totalorder %s1502_s23, %s1502_s23 }
  0x2c   :  { %253 = vmatpush1.bf16.msra.mxu0 %v1591_v12  ;;  %294 = vmatpush1.bf16.msra.mxu1 %v1611_v19 }
  0x2d   :  { %254 = vmatprep.subr.bf16.mxu0 %v1593_v13  ;;  %295 = vmatprep.subr.bf16.mxu1 %v1614_v20  ;;  %p1509_p13 = por %p1508_p12, %p1507_p11 }
  0x2f   :  { %p1510_p0 = pnand %p1509_p13, %p1503_p10 }
  0x30   :  { %255 = vmatpush1.bf16.msra.mxu0 %v1605_v17  ;;  %296 = vmatpush1.bf16.msra.mxu1 %v1623_v23 }
  0x31   :  { %256 = vmatprep.subr.bf16.mxu0 %v1608_v18  ;;  %297 = vmatprep.subr.bf16.mxu1 %v1626_v24 }
  0x34   :  { %257 = vmatpush1.bf16.msra.mxu0 %v1617_v21  ;;  %298 = vmatpush1.bf16.msra.mxu1 %v1635_v27 }
  0x35   :  { %258 = vmatprep.subr.bf16.mxu0 %v1619_v22  ;;  %299 = vmatprep.subr.bf16.mxu1 %v1638_v28 }
  0x38   :  { %259 = vmatpush1.bf16.msra.mxu0 %v1629_v25  ;;  %300 = vmatpush1.bf16.msra.mxu1 %v1645_v30 }
  0x39   :  { %260 = vmatprep.subr.bf16.mxu0 %v1632_v26  ;;  %301 = vmatprep.subr.bf16.mxu1 %v1648_v31 }
  0x3c   :  { %261 = vmatpush1.bf16.msra.mxu0 %v1641_v29  ;;  %302 = vmatpush1.bf16.msra.mxu1 %v1652_v32 }
  0x3d   :  { %362 = vmatprep.subr.bf16.mxu0 %v1560_v1  ;;  %403 = vmatprep.subr.bf16.mxu1 %v1573_v6 }
  0x3f   :  { %279 = vmatmul.mubr.bf16.vlgmr.msra.gmra.mxu0 %v1535_v33  ;;  %320 = vmatmul.mubr.bf16.vlgmr.msra.gmra.mxu1 %v1535_v33 }
  0x40   :  { %363 = vmatpush1.bf16.msra.mxu0 %v1562_v2  ;;  %394 = vmatprep.mubr.bf16.mxu0 %v1534_v0 }
  0x41   :  { %364 = vmatprep.subr.bf16.mxu0 %v1565_v3  ;;  %404 = vmatpush1.bf16.msra.mxu1 %v1575_v7 }
  0x42   :  { %405 = vmatprep.subr.bf16.mxu1 %v1585_v10  ;;  %435 = vmatprep.mubr.bf16.mxu1 %v1534_v0 }
  0x44   :  { %365 = vmatpush1.bf16.msra.mxu0 %v1568_v4 }
  0x45   :  { %366 = vmatprep.subr.bf16.mxu0 %v1571_v5  ;;  %406 = vmatpush1.bf16.msra.mxu1 %v1587_v11 }
  0x46   :  { %407 = vmatprep.subr.bf16.mxu1 %v1595_v14 }
  0x48   :  { %367 = vmatpush1.bf16.msra.mxu0 %v1578_v8 }
  0x49   :  { %368 = vmatprep.subr.bf16.mxu0 %v1582_v9  ;;  %408 = vmatpush1.bf16.msra.mxu1 %v1599_v15 }
  0x4a   :  { %409 = vmatprep.subr.bf16.mxu1 %v1602_v16 }
  0x4c   :  { %369 = vmatpush1.bf16.msra.mxu0 %v1591_v12 }
  0x4d   :  { %370 = vmatprep.subr.bf16.mxu0 %v1593_v13  ;;  %410 = vmatpush1.bf16.msra.mxu1 %v1611_v19 }
  0x4e   :  { %411 = vmatprep.subr.bf16.mxu1 %v1614_v20 }
  0x50   :  { %371 = vmatpush1.bf16.msra.mxu0 %v1605_v17 }
  0x51   :  { %372 = vmatprep.subr.bf16.mxu0 %v1608_v18  ;;  %412 = vmatpush1.bf16.msra.mxu1 %v1623_v23 }
  0x52   :  { %413 = vmatprep.subr.bf16.mxu1 %v1626_v24 }
  0x54   :  { %373 = vmatpush1.bf16.msra.mxu0 %v1617_v21 }
  0x55   :  { %374 = vmatprep.subr.bf16.mxu0 %v1619_v22  ;;  %414 = vmatpush1.bf16.msra.mxu1 %v1635_v27 }
  0x56   :  { %415 = vmatprep.subr.bf16.mxu1 %v1638_v28 }
  0x58   :  { %375 = vmatpush1.bf16.msra.mxu0 %v1629_v25 }
  0x59   :  { %376 = vmatprep.subr.bf16.mxu0 %v1632_v26  ;;  %416 = vmatpush1.bf16.msra.mxu1 %v1645_v30 }
  0x5a   :  { %417 = vmatprep.subr.bf16.mxu1 %v1648_v31 }
  0x5c   :  { %377 = vmatpush1.bf16.msra.mxu0 %v1641_v29 }
  0x5d   :  { %478 = vmatprep.subr.bf16.mxu0 %v1560_v1  ;;  %418 = vmatpush1.bf16.msra.mxu1 %v1652_v32 }
  0x5e   :  { %519 = vmatprep.subr.bf16.mxu1 %v1573_v6 }
  0xff   :  { %v280_v35 = vpop.f32.mrf.mxu0  ;;  %v321_v43 = vpop.f32.mrf.mxu1 }
 0x100   :  { %v328_v37 = vadd.f32 %v280_v35, %v49_v34  ;;  %v330_v51 = vadd.f32 %v321_v43, %v51_v49 }
 0x101   :  { %v282_v38 = vpop.f32.mrf.mxu0  ;;  %v323_v45 = vpop.f32.mrf.mxu1 }
 0x102   :  { %v1222_v39 = vmul.f32 -1.442695, %v328_v37  ;;  %v329_v40 = vadd.f32 %v282_v38, %v50_v36  ;;  %v331_v50 = vadd.f32 %v323_v45, %v52_v46  ;;  %v357_v38 = vld [vmem:[#allocation4 + $0x20] sm:$0xff] }
 0x103   :  { %v284_v41 = vpop.f32.mrf.mxu0  ;;  %v325_v47 = vpop.f32.mrf.mxu1 }
 0x104   :  { %1303 = vpow2.f32 %v1222_v39  ;;  %v1223_v42 = vmul.f32 -1.442695, %v329_v40  ;;  %v1224_v52 = vmul.f32 -1.442695, %v331_v50  ;;  %v358_v41 = vld [vmem:[#allocation4 + $0x28] sm:$0xff] }
 0x105   :  { %v285_v44 = vpop.f32.mrf.mxu0  ;;  %v326_v48 = vpop.f32.mrf.mxu1 }
 0x106   :  { %1305 = vpow2.f32 %v1223_v42 }
 0x107   :  { %1307 = vtanh.f32 %v330_v51 }
 0x108   :  { %1309 = vpow2.f32 %v1224_v52  ;;  %v360_v52 = vld [vmem:[#allocation4 + $0x38] sm:$0xff] }
 0x111   :  { %v1304_v53 = vpop.eup %1303 }
 0x112   :  { %v335_v54 = vadd.f32 1.0, %v1304_v53 }
 0x113   :  { %v1306_v55 = vpop.eup %1305 }
 0x114   :  { %1311 = vrcp.f32 %v335_v54  ;;  %v341_v56 = vadd.f32 1.0, %v1306_v55  ;;  %v1308_v57 = vpop.eup %1307  ;;  %v359_v54 = vld [vmem:[#allocation4 + $0x30] sm:$0xff] }
 0x115   :  { %v1310_v58 = vpop.eup %1309 }
 0x116   :  { %1313 = vrcp.f32 %v341_v56  ;;  %v348_v61 = vadd.f32 1.0, %v1310_v58 }
 0x118   :  { %1315 = vrcp.f32 %v348_v61 }
 0x121   :  { %v1312_v59 = vpop.eup %1311 }
 0x122   :  { %v352_v63 = vmul.f32 %v1312_v59, %v1308_v57 }
 0x123   :  { %v1314_v60 = vpop.eup %1313 }
 0x124   :  { %v351_v62 = vmul.f32 0.0, %v1314_v60 }
 0x125   :  { %v1316_v34 = vpop.eup %1315 }
 0x126   :  { %v1692_v33 = vadd.f32 %v352_v63, %v351_v62 }
 0x128   :  { %1317 = vtanh.f32 %v1692_v33 }
 0x135   :  { %v1318_v35 = vpop.eup %1317 }
 0x136   :  { %v355_v36 = vmul.f32 %v1318_v35, %v1316_v34 }
 0x138   :  { %v361_v37 = vpack.c.bf16 %v355_v36, %v355_v36 }
 0x13a   :  { %395 = vmatmul.mubr.bf16.vlgmr.msra.gmra.mxu0 %v361_v37  ;;  %436 = vmatmul.mubr.bf16.vlgmr.msra.gmra.mxu1 %v361_v37 }
 0x13b   :  { %479 = vmatpush1.bf16.msra.mxu0 %v1562_v2  ;;  %520 = vmatpush1.bf16.msra.mxu1 %v1575_v7 }
 0x13c   :  { %480 = vmatprep.subr.bf16.mxu0 %v1565_v3  ;;  %521 = vmatprep.subr.bf16.mxu1 %v1585_v10 }
 0x13d   :  { %510 = vmatprep.mubr.bf16.mxu0 %v1534_v0  ;;  %551 = vmatprep.mubr.bf16.mxu1 %v1534_v0 }
 0x13f   :  { %481 = vmatpush1.bf16.msra.mxu0 %v1568_v4  ;;  %522 = vmatpush1.bf16.msra.mxu1 %v1587_v11 }
 0x140   :  { %482 = vmatprep.subr.bf16.mxu0 %v1571_v5  ;;  %523 = vmatprep.subr.bf16.mxu1 %v1595_v14 }
 0x143   :  { %483 = vmatpush1.bf16.msra.mxu0 %v1578_v8  ;;  %524 = vmatpush1.bf16.msra.mxu1 %v1599_v15 }
 0x144   :  { %484 = vmatprep.subr.bf16.mxu0 %v1582_v9  ;;  %525 = vmatprep.subr.bf16.mxu1 %v1602_v16 }
 0x147   :  { %485 = vmatpush1.bf16.msra.mxu0 %v1591_v12  ;;  %526 = vmatpush1.bf16.msra.mxu1 %v1611_v19 }
 0x148   :  { %486 = vmatprep.subr.bf16.mxu0 %v1593_v13  ;;  %527 = vmatprep.subr.bf16.mxu1 %v1614_v20 }
 0x14b   :  { %487 = vmatpush1.bf16.msra.mxu0 %v1605_v17  ;;  %528 = vmatpush1.bf16.msra.mxu1 %v1623_v23 }
 0x14c   :  { %488 = vmatprep.subr.bf16.mxu0 %v1608_v18  ;;  %529 = vmatprep.subr.bf16.mxu1 %v1626_v24 }
 0x14f   :  { %489 = vmatpush1.bf16.msra.mxu0 %v1617_v21  ;;  %530 = vmatpush1.bf16.msra.mxu1 %v1635_v27 }
 0x150   :  { %490 = vmatprep.subr.bf16.mxu0 %v1619_v22  ;;  %531 = vmatprep.subr.bf16.mxu1 %v1638_v28 }
 0x153   :  { %491 = vmatpush1.bf16.msra.mxu0 %v1629_v25  ;;  %532 = vmatpush1.bf16.msra.mxu1 %v1645_v30 }
 0x154   :  { %492 = vmatprep.subr.bf16.mxu0 %v1632_v26  ;;  %533 = vmatprep.subr.bf16.mxu1 %v1648_v31 }
 0x157   :  { %493 = vmatpush1.bf16.msra.mxu0 %v1641_v29  ;;  %534 = vmatpush1.bf16.msra.mxu1 %v1652_v32 }
 0x158   :  { %594 = vmatprep.subr.bf16.mxu0 %v1560_v1  ;;  %635 = vmatprep.subr.bf16.mxu1 %v1573_v6 }
 0x1fa   :  { %v396_v39 = vpop.f32.mrf.mxu0  ;;  %v437_v40 = vpop.f32.mrf.mxu1 }
 0x1fb   :  { %v444_v42 = vadd.f32 %v396_v39, %v357_v38  ;;  %v446_v57 = vadd.f32 %v437_v40, %v359_v54 }
 0x1fc   :  { %v398_v43 = vpop.f32.mrf.mxu0  ;;  %v439_v44 = vpop.f32.mrf.mxu1 }
 0x1fd   :  { %v1225_v45 = vmul.f32 -1.442695, %v444_v42  ;;  %v445_v46 = vadd.f32 %v398_v43, %v358_v41  ;;  %v447_v53 = vadd.f32 %v439_v44, %v360_v52 }
 0x1fe   :  { %v400_v47 = vpop.f32.mrf.mxu0  ;;  %v441_v48 = vpop.f32.mrf.mxu1 }
 0x1ff   :  { %1319 = vpow2.f32 %v1225_v45  ;;  %v1226_v49 = vmul.f32 -1.442695, %v445_v46  ;;  %v1227_v55 = vmul.f32 -1.442695, %v447_v53  ;;  %v474_v45 = vld [vmem:[#allocation4 + $0x48] sm:$0xff] }
 0x200   :  { %v401_v50 = vpop.f32.mrf.mxu0  ;;  %v442_v51 = vpop.f32.mrf.mxu1 }
 0x201   :  { %1321 = vpow2.f32 %v1226_v49 }
 0x202   :  { %1323 = vpow2.f32 %v1227_v55 }
 0x20c   :  { %v1320_v56 = vpop.eup %1319 }
 0x20d   :  { %v451_v58 = vadd.f32 1.0, %v1320_v56  ;;  %v476_v56 = vld [vmem:[#allocation4 + $0x58] sm:$0xff] }
 0x20e   :  { %v1322_v59 = vpop.eup %1321 }
 0x20f   :  { %1325 = vrcp.f32 %v451_v58  ;;  %v457_v60 = vadd.f32 1.0, %v1322_v59  ;;  %v1324_v61 = vpop.eup %1323  ;;  %v475_v58 = vld [vmem:[#allocation4 + $0x50] sm:$0xff] }
 0x210   :  { %1327 = vtanh.f32 %v446_v57  ;;  %v464_v35 = vadd.f32 1.0, %v1324_v61 }
 0x211   :  { %1329 = vrcp.f32 %v457_v60 }
 0x212   :  { %1331 = vrcp.f32 %v464_v35 }
 0x21c   :  { %v1326_v62 = vpop.eup %1325 }
 0x21d   :  { %v1328_v63 = vpop.eup %1327 }
 0x21e   :  { %v1330_v34 = vpop.eup %1329  ;;  %v468_v36 = vmul.f32 %v1328_v63, %v1326_v62 }
 0x21f   :  { %v467_v37 = vmul.f32 %v1330_v34, %v1692_v33  ;;  %v1332_v39 = vpop.eup %1331  ;;  %v473_v33 = vld [vmem:[#allocation4 + $0x40] sm:$0xff] }
 0x221   :  { %v1730_v38 = vadd.f32 %v468_v36, %v467_v37 }
 0x223   :  { %1333 = vtanh.f32 %v1730_v38 }
 0x230   :  { %v1334_v40 = vpop.eup %1333 }
 0x231   :  { %v471_v41 = vmul.f32 %v1334_v40, %v1332_v39 }
 0x233   :  { %v477_v42 = vpack.c.bf16 %v471_v41, %v471_v41 }
 0x235   :  { %511 = vmatmul.mubr.bf16.vlgmr.msra.gmra.mxu0 %v477_v42  ;;  %552 = vmatmul.mubr.bf16.vlgmr.msra.gmra.mxu1 %v477_v42 }
 0x236   :  { %595 = vmatpush1.bf16.msra.mxu0 %v1562_v2  ;;  %636 = vmatpush1.bf16.msra.mxu1 %v1575_v7 }
 0x237   :  { %596 = vmatprep.subr.bf16.mxu0 %v1565_v3  ;;  %637 = vmatprep.subr.bf16.mxu1 %v1585_v10 }
 0x238   :  { %626 = vmatprep.mubr.bf16.mxu0 %v1534_v0  ;;  %667 = vmatprep.mubr.bf16.mxu1 %v1534_v0 }
 0x23a   :  { %597 = vmatpush1.bf16.msra.mxu0 %v1568_v4  ;;  %638 = vmatpush1.bf16.msra.mxu1 %v1587_v11 }
 0x23b   :  { %598 = vmatprep.subr.bf16.mxu0 %v1571_v5  ;;  %639 = vmatprep.subr.bf16.mxu1 %v1595_v14 }
 0x23e   :  { %599 = vmatpush1.bf16.msra.mxu0 %v1578_v8  ;;  %640 = vmatpush1.bf16.msra.mxu1 %v1599_v15 }
 0x23f   :  { %600 = vmatprep.subr.bf16.mxu0 %v1582_v9  ;;  %641 = vmatprep.subr.bf16.mxu1 %v1602_v16 }
 0x242   :  { %601 = vmatpush1.bf16.msra.mxu0 %v1591_v12  ;;  %642 = vmatpush1.bf16.msra.mxu1 %v1611_v19 }
 0x243   :  { %602 = vmatprep.subr.bf16.mxu0 %v1593_v13  ;;  %643 = vmatprep.subr.bf16.mxu1 %v1614_v20 }
 0x246   :  { %603 = vmatpush1.bf16.msra.mxu0 %v1605_v17  ;;  %644 = vmatpush1.bf16.msra.mxu1 %v1623_v23 }
 0x247   :  { %604 = vmatprep.subr.bf16.mxu0 %v1608_v18  ;;  %645 = vmatprep.subr.bf16.mxu1 %v1626_v24 }
 0x24a   :  { %605 = vmatpush1.bf16.msra.mxu0 %v1617_v21  ;;  %646 = vmatpush1.bf16.msra.mxu1 %v1635_v27 }
 0x24b   :  { %606 = vmatprep.subr.bf16.mxu0 %v1619_v22  ;;  %647 = vmatprep.subr.bf16.mxu1 %v1638_v28 }
 0x24e   :  { %607 = vmatpush1.bf16.msra.mxu0 %v1629_v25  ;;  %648 = vmatpush1.bf16.msra.mxu1 %v1645_v30 }
 0x24f   :  { %608 = vmatprep.subr.bf16.mxu0 %v1632_v26  ;;  %649 = vmatprep.subr.bf16.mxu1 %v1648_v31 }
 0x252   :  { %609 = vmatpush1.bf16.msra.mxu0 %v1641_v29  ;;  %650 = vmatpush1.bf16.msra.mxu1 %v1652_v32 }
 0x253   :  { %710 = vmatprep.subr.bf16.mxu0 %v1560_v1  ;;  %751 = vmatprep.subr.bf16.mxu1 %v1573_v6 }
 0x2f5   :  { %v512_v43 = vpop.f32.mrf.mxu0  ;;  %v553_v44 = vpop.f32.mrf.mxu1 }
 0x2f6   :  { %v560_v46 = vadd.f32 %v512_v43, %v473_v33  ;;  %v562_v61 = vadd.f32 %v553_v44, %v475_v58 }
 0x2f7   :  { %v514_v47 = vpop.f32.mrf.mxu0  ;;  %v555_v48 = vpop.f32.mrf.mxu1 }
 0x2f8   :  { %v1228_v49 = vmul.f32 -1.442695, %v560_v46  ;;  %v561_v50 = vadd.f32 %v514_v47, %v474_v45  ;;  %v563_v57 = vadd.f32 %v555_v48, %v476_v56 }
 0x2f9   :  { %v516_v51 = vpop.f32.mrf.mxu0  ;;  %v557_v52 = vpop.f32.mrf.mxu1 }
 0x2fa   :  { %1335 = vpow2.f32 %v1228_v49  ;;  %v1229_v53 = vmul.f32 -1.442695, %v561_v50  ;;  %v1230_v59 = vmul.f32 -1.442695, %v563_v57  ;;  %v590_v49 = vld [vmem:[#allocation4 + $0x68] sm:$0xff] }
 0x2fb   :  { %v517_v54 = vpop.f32.mrf.mxu0  ;;  %v558_v55 = vpop.f32.mrf.mxu1 }
 0x2fc   :  { %1337 = vpow2.f32 %v1229_v53 }
 0x2fd   :  { %1339 = vpow2.f32 %v1230_v59 }
 0x307   :  { %v1336_v60 = vpop.eup %1335 }
 0x308   :  { %v567_v62 = vadd.f32 1.0, %v1336_v60  ;;  %v592_v60 = vld [vmem:[#allocation4 + $0x78] sm:$0xff] }
 0x309   :  { %v1338_v63 = vpop.eup %1337 }
 0x30a   :  { %1341 = vrcp.f32 %v567_v62  ;;  %v573_v34 = vadd.f32 1.0, %v1338_v63  ;;  %v1340_v35 = vpop.eup %1339  ;;  %v591_v62 = vld [vmem:[#allocation4 + $0x70] sm:$0xff] }
 0x30b   :  { %1343 = vtanh.f32 %v562_v61  ;;  %v580_v40 = vadd.f32 1.0, %v1340_v35 }
 0x30c   :  { %1345 = vrcp.f32 %v573_v34 }
 0x30d   :  { %1347 = vrcp.f32 %v580_v40 }
 0x317   :  { %v1342_v36 = vpop.eup %1341 }
 0x318   :  { %v1344_v37 = vpop.eup %1343 }
 0x319   :  { %v1346_v39 = vpop.eup %1345  ;;  %v584_v41 = vmul.f32 %v1344_v37, %v1342_v36 }
 0x31a   :  { %v583_v42 = vmul.f32 %v1346_v39, %v1730_v38  ;;  %v1348_v43 = vpop.eup %1347  ;;  %v589_v38 = vld [vmem:[#allocation4 + $0x60] sm:$0xff] }
 0x31c   :  { %v1768_v33 = vadd.f32 %v584_v41, %v583_v42 }
 0x31e   :  { %1349 = vtanh.f32 %v1768_v33 }
 0x32b   :  { %v1350_v44 = vpop.eup %1349 }
 0x32c   :  { %v587_v45 = vmul.f32 %v1350_v44, %v1348_v43 }
 0x32e   :  { %v593_v46 = vpack.c.bf16 %v587_v45, %v587_v45 }
 0x330   :  { %627 = vmatmul.mubr.bf16.vlgmr.msra.gmra.mxu0 %v593_v46  ;;  %668 = vmatmul.mubr.bf16.vlgmr.msra.gmra.mxu1 %v593_v46 }
 0x331   :  { %711 = vmatpush1.bf16.msra.mxu0 %v1562_v2  ;;  %752 = vmatpush1.bf16.msra.mxu1 %v1575_v7 }
 0x332   :  { %712 = vmatprep.subr.bf16.mxu0 %v1565_v3  ;;  %753 = vmatprep.subr.bf16.mxu1 %v1585_v10 }
 0x333   :  { %742 = vmatprep.mubr.bf16.mxu0 %v1534_v0  ;;  %783 = vmatprep.mubr.bf16.mxu1 %v1534_v0 }
 0x335   :  { %713 = vmatpush1.bf16.msra.mxu0 %v1568_v4  ;;  %754 = vmatpush1.bf16.msra.mxu1 %v1587_v11 }
 0x336   :  { %714 = vmatprep.subr.bf16.mxu0 %v1571_v5  ;;  %755 = vmatprep.subr.bf16.mxu1 %v1595_v14 }
 0x339   :  { %715 = vmatpush1.bf16.msra.mxu0 %v1578_v8  ;;  %756 = vmatpush1.bf16.msra.mxu1 %v1599_v15 }
 0x33a   :  { %716 = vmatprep.subr.bf16.mxu0 %v1582_v9  ;;  %757 = vmatprep.subr.bf16.mxu1 %v1602_v16 }
 0x33d   :  { %717 = vmatpush1.bf16.msra.mxu0 %v1591_v12  ;;  %758 = vmatpush1.bf16.msra.mxu1 %v1611_v19 }
 0x33e   :  { %718 = vmatprep.subr.bf16.mxu0 %v1593_v13  ;;  %759 = vmatprep.subr.bf16.mxu1 %v1614_v20 }
 0x341   :  { %719 = vmatpush1.bf16.msra.mxu0 %v1605_v17  ;;  %760 = vmatpush1.bf16.msra.mxu1 %v1623_v23 }
 0x342   :  { %720 = vmatprep.subr.bf16.mxu0 %v1608_v18  ;;  %761 = vmatprep.subr.bf16.mxu1 %v1626_v24 }
 0x345   :  { %721 = vmatpush1.bf16.msra.mxu0 %v1617_v21  ;;  %762 = vmatpush1.bf16.msra.mxu1 %v1635_v27 }
 0x346   :  { %722 = vmatprep.subr.bf16.mxu0 %v1619_v22  ;;  %763 = vmatprep.subr.bf16.mxu1 %v1638_v28 }
 0x349   :  { %723 = vmatpush1.bf16.msra.mxu0 %v1629_v25  ;;  %764 = vmatpush1.bf16.msra.mxu1 %v1645_v30 }
 0x34a   :  { %724 = vmatprep.subr.bf16.mxu0 %v1632_v26  ;;  %765 = vmatprep.subr.bf16.mxu1 %v1648_v31 }
 0x34d   :  { %725 = vmatpush1.bf16.msra.mxu0 %v1641_v29  ;;  %766 = vmatpush1.bf16.msra.mxu1 %v1652_v32 }
 0x34e   :  { %826 = vmatprep.subr.bf16.mxu0 %v1560_v1  ;;  %867 = vmatprep.subr.bf16.mxu1 %v1573_v6 }
 0x3f0   :  { %v628_v47 = vpop.f32.mrf.mxu0  ;;  %v669_v48 = vpop.f32.mrf.mxu1 }
 0x3f1   :  { %v676_v50 = vadd.f32 %v628_v47, %v589_v38  ;;  %v678_v35 = vadd.f32 %v669_v48, %v591_v62 }
 0x3f2   :  { %v630_v51 = vpop.f32.mrf.mxu0  ;;  %v671_v52 = vpop.f32.mrf.mxu1 }
 0x3f3   :  { %v1231_v53 = vmul.f32 -1.442695, %v676_v50  ;;  %v677_v54 = vadd.f32 %v630_v51, %v590_v49  ;;  %v679_v61 = vadd.f32 %v671_v52, %v592_v60 }
 0x3f4   :  { %v632_v55 = vpop.f32.mrf.mxu0  ;;  %v673_v56 = vpop.f32.mrf.mxu1 }
 0x3f5   :  { %1351 = vpow2.f32 %v1231_v53  ;;  %v1232_v57 = vmul.f32 -1.442695, %v677_v54  ;;  %v1233_v63 = vmul.f32 -1.442695, %v679_v61  ;;  %v706_v53 = vld [vmem:[#allocation4 + $0x88] sm:$0xff] }
 0x3f6   :  { %v633_v58 = vpop.f32.mrf.mxu0  ;;  %v674_v59 = vpop.f32.mrf.mxu1 }
 0x3f7   :  { %1353 = vpow2.f32 %v1232_v57 }
 0x3f8   :  { %1355 = vpow2.f32 %v1233_v63 }
 0x402   :  { %v1352_v34 = vpop.eup %1351 }
 0x403   :  { %v683_v36 = vadd.f32 1.0, %v1352_v34  ;;  %v708_v34 = vld [vmem:[#allocation4 + $0x98] sm:$0xff] }
 0x404   :  { %v1354_v37 = vpop.eup %1353 }
 0x405   :  { %1357 = vrcp.f32 %v683_v36  ;;  %v689_v39 = vadd.f32 1.0, %v1354_v37  ;;  %v1356_v40 = vpop.eup %1355 }
 0x406   :  { %1359 = vtanh.f32 %v678_v35  ;;  %v696_v44 = vadd.f32 1.0, %v1356_v40  ;;  %v707_v35 = vld [vmem:[#allocation4 + $0x90] sm:$0xff] }
 0x407   :  { %1361 = vrcp.f32 %v689_v39 }
 0x408   :  { %1363 = vrcp.f32 %v696_v44 }
 0x412   :  { %v1358_v41 = vpop.eup %1357 }
 0x413   :  { %v1360_v42 = vpop.eup %1359 }
 0x414   :  { %v1362_v43 = vpop.eup %1361  ;;  %v700_v45 = vmul.f32 %v1360_v42, %v1358_v41 }
 0x415   :  { %v699_v46 = vmul.f32 %v1362_v43, %v1768_v33  ;;  %v1364_v47 = vpop.eup %1363  ;;  %v705_v33 = vld [vmem:[#allocation4 + $0x80] sm:$0xff] }
 0x417   :  { %v1806_v38 = vadd.f32 %v700_v45, %v699_v46 }
 0x419   :  { %1365 = vtanh.f32 %v1806_v38 }
 0x426   :  { %v1366_v48 = vpop.eup %1365 }
 0x427   :  { %v703_v49 = vmul.f32 %v1366_v48, %v1364_v47 }
 0x429   :  { %v709_v50 = vpack.c.bf16 %v703_v49, %v703_v49 }
 0x42b   :  { %743 = vmatmul.mubr.bf16.vlgmr.msra.gmra.mxu0 %v709_v50  ;;  %784 = vmatmul.mubr.bf16.vlgmr.msra.gmra.mxu1 %v709_v50 }
 0x42c   :  { %827 = vmatpush1.bf16.msra.mxu0 %v1562_v2  ;;  %868 = vmatpush1.bf16.msra.mxu1 %v1575_v7 }
 0x42d   :  { %828 = vmatprep.subr.bf16.mxu0 %v1565_v3  ;;  %869 = vmatprep.subr.bf16.mxu1 %v1585_v10 }
 0x42e   :  { %858 = vmatprep.mubr.bf16.mxu0 %v1534_v0  ;;  %899 = vmatprep.mubr.bf16.mxu1 %v1534_v0 }
 0x430   :  { %829 = vmatpush1.bf16.msra.mxu0 %v1568_v4  ;;  %870 = vmatpush1.bf16.msra.mxu1 %v1587_v11 }
 0x431   :  { %830 = vmatprep.subr.bf16.mxu0 %v1571_v5  ;;  %871 = vmatprep.subr.bf16.mxu1 %v1595_v14 }
 0x434   :  { %831 = vmatpush1.bf16.msra.mxu0 %v1578_v8  ;;  %872 = vmatpush1.bf16.msra.mxu1 %v1599_v15 }
 0x435   :  { %832 = vmatprep.subr.bf16.mxu0 %v1582_v9  ;;  %873 = vmatprep.subr.bf16.mxu1 %v1602_v16 }
 0x438   :  { %833 = vmatpush1.bf16.msra.mxu0 %v1591_v12  ;;  %874 = vmatpush1.bf16.msra.mxu1 %v1611_v19 }
 0x439   :  { %834 = vmatprep.subr.bf16.mxu0 %v1593_v13  ;;  %875 = vmatprep.subr.bf16.mxu1 %v1614_v20 }
 0x43c   :  { %835 = vmatpush1.bf16.msra.mxu0 %v1605_v17  ;;  %876 = vmatpush1.bf16.msra.mxu1 %v1623_v23 }
 0x43d   :  { %836 = vmatprep.subr.bf16.mxu0 %v1608_v18  ;;  %877 = vmatprep.subr.bf16.mxu1 %v1626_v24 }
 0x440   :  { %837 = vmatpush1.bf16.msra.mxu0 %v1617_v21  ;;  %878 = vmatpush1.bf16.msra.mxu1 %v1635_v27 }
 0x441   :  { %838 = vmatprep.subr.bf16.mxu0 %v1619_v22  ;;  %879 = vmatprep.subr.bf16.mxu1 %v1638_v28 }
 0x444   :  { %839 = vmatpush1.bf16.msra.mxu0 %v1629_v25  ;;  %880 = vmatpush1.bf16.msra.mxu1 %v1645_v30 }
 0x445   :  { %840 = vmatprep.subr.bf16.mxu0 %v1632_v26  ;;  %881 = vmatprep.subr.bf16.mxu1 %v1648_v31 }
 0x448   :  { %841 = vmatpush1.bf16.msra.mxu0 %v1641_v29  ;;  %882 = vmatpush1.bf16.msra.mxu1 %v1652_v32 }
 0x449   :  { %942 = vmatprep.subr.bf16.mxu0 %v1560_v1  ;;  %983 = vmatprep.subr.bf16.mxu1 %v1573_v6 }
 0x4eb   :  { %v744_v51 = vpop.f32.mrf.mxu0  ;;  %v785_v52 = vpop.f32.mrf.mxu1 }
 0x4ec   :  { %v792_v54 = vadd.f32 %v744_v51, %v705_v33  ;;  %v794_v39 = vadd.f32 %v785_v52, %v707_v35  ;;  %v1440_v35 = vld [vmem:[#allocation7 + $0xa0] ss:$16 sps:$4 sm:$0xff]  }
 0x4ed   :  { %v746_v55 = vpop.f32.mrf.mxu0  ;;  %v787_v56 = vpop.f32.mrf.mxu1 }
 0x4ee   :  { %v1234_v57 = vmul.f32 -1.442695, %v792_v54  ;;  %v793_v58 = vadd.f32 %v746_v55, %v706_v53  ;;  %v795_v1 = vadd.f32 %v787_v56, %v708_v34  ;;  %v1438_v34 = vld [vmem:[#allocation7 + $0xa4] ss:$16 sps:$4 sm:$0xff]  }
 0x4ef   :  { %v748_v59 = vpop.f32.mrf.mxu0  ;;  %v789_v60 = vpop.f32.mrf.mxu1 }
 0x4f0   :  { %1367 = vpow2.f32 %v1234_v57  ;;  %v1235_v61 = vmul.f32 -1.442695, %v793_v58  ;;  %v1236_v36 = vmul.f32 -1.442695, %v795_v1  ;;  %v1432_v58 = vld [vmem:[#allocation7 + $0xe0] ss:$16 sps:$4 sm:$0xff]  }
 0x4f1   :  { %v749_v62 = vpop.f32.mrf.mxu0  ;;  %v790_v63 = vpop.f32.mrf.mxu1  ;;  %v1433_v59 = vld [vmem:[#allocation7 + $0xe8] ss:$16 sps:$4 sm:$0xff]   ;;  %v1434_v60 = vld [vmem:[#allocation7 + $0xc4] ss:$16 sps:$4 sm:$0xff]   ;;  %v1439_v1 = vld [vmem:[#allocation7 + $0xac] ss:$16 sps:$4 sm:$0xff]  }
 0x4f2   :  { %1369 = vpow2.f32 %v1235_v61  ;;  %v1435_v61 = vld [vmem:[#allocation7 + $0xcc] ss:$16 sps:$4 sm:$0xff]   ;;  %v1436_v62 = vld [vmem:[#allocation7 + $0xc0] ss:$16 sps:$4 sm:$0xff]   ;;  %v1437_v63 = vld [vmem:[#allocation7 + $0xc8] ss:$16 sps:$4 sm:$0xff]  }
 0x4f3   :  { %1371 = vpow2.f32 %v1236_v36  ;;  %v1441_v36 = vld [vmem:[#allocation7 + $0xa8] ss:$16 sps:$4 sm:$0xff]  }
 0x4fd   :  { %v1368_v37 = vpop.eup %1367 }
 0x4fe   :  { %v799_v40 = vadd.f32 1.0, %v1368_v37  ;;  %v1442_v37 = vld [vmem:[#allocation7 + $0x84] ss:$16 sps:$4 sm:$0xff]  }
 0x4ff   :  { %v1370_v41 = vpop.eup %1369 }
 0x500   :  { %1373 = vrcp.f32 %v799_v40  ;;  %v805_v42 = vadd.f32 1.0, %v1370_v41  ;;  %v1372_v43 = vpop.eup %1371  ;;  %v1444_v40 = vld [vmem:[#allocation7 + $0x80] ss:$16 sps:$4 sm:$0xff]   ;;  %v1445_v41 = vld [vmem:[#allocation7 + $0x88] ss:$16 sps:$4 sm:$0xff]  }
 0x501   :  { %1375 = vtanh.f32 %v794_v39  ;;  %v812_v47 = vadd.f32 1.0, %v1372_v43  ;;  %v1443_v39 = vld [vmem:[#allocation7 + $0x8c] ss:$16 sps:$4 sm:$0xff]   ;;  %v1448_v43 = vld [vmem:[#allocation7 + $0x60] ss:$16 sps:$4 sm:$0xff]  }
 0x502   :  { %1377 = vrcp.f32 %v805_v42  ;;  %v1447_v42 = vld [vmem:[#allocation7 + $0x6c] ss:$16 sps:$4 sm:$0xff]  }
 0x503   :  { %1379 = vrcp.f32 %v812_v47  ;;  %v1452_v47 = vld [vmem:[#allocation7 + $0x40] ss:$16 sps:$4 sm:$0xff]  }
 0x50d   :  { %v1374_v44 = vpop.eup %1373 }
 0x50e   :  { %v1376_v45 = vpop.eup %1375 }
 0x50f   :  { %v1378_v46 = vpop.eup %1377  ;;  %v816_v48 = vmul.f32 %v1376_v45, %v1374_v44  ;;  %v1449_v44 = vld [vmem:[#allocation7 + $0x68] ss:$16 sps:$4 sm:$0xff]   ;;  %v1450_v45 = vld [vmem:[#allocation7 + $0x44] ss:$16 sps:$4 sm:$0xff]  }
 0x510   :  { %v815_v49 = vmul.f32 %v1378_v46, %v1806_v38  ;;  %v1380_v33 = vpop.eup %1379  ;;  %v1451_v46 = vld [vmem:[#allocation7 + $0x4c] ss:$16 sps:$4 sm:$0xff]  }
 0x512   :  { %v1844_v50 = vadd.f32 %v816_v48, %v815_v49  ;;  %v1453_v48 = vld [vmem:[#allocation7 + $0x48] ss:$16 sps:$4 sm:$0xff]   ;;  %v1454_v49 = vld [vmem:[#allocation7 + $0x24] ss:$16 sps:$4 sm:$0xff]  }
 0x514   :  { %1381 = vtanh.f32 %v1844_v50 }
 0x521   :  { %v1382_v51 = vpop.eup %1381 }
 0x522   :  { %v819_v52 = vmul.f32 %v1382_v51, %v1380_v33  ;;  %v1456_v33 = vld [vmem:[#allocation7 + $0x20] ss:$16 sps:$4 sm:$0xff]   ;;  %v1457_v51 = vld [vmem:[#allocation7 + $0x28] ss:$16 sps:$4 sm:$0xff]  }
 0x524   :  { %v825_v53 = vpack.c.bf16 %v819_v52, %v819_v52  ;;  %v1458_v52 = vld [vmem:[#allocation7 + $0x4] ss:$16 sps:$4 sm:$0xff]  }
 0x526   :  { %859 = vmatmul.mubr.bf16.vlgmr.msra.gmra.mxu0 %v825_v53  ;;  %900 = vmatmul.mubr.bf16.vlgmr.msra.gmra.mxu1 %v825_v53  ;;  %v1459_v53 = vld [vmem:[#allocation7 + $0xc] ss:$16 sps:$4 sm:$0xff]  }
 0x527   :  { %943 = vmatpush1.bf16.msra.mxu0 %v1562_v2  ;;  %984 = vmatpush1.bf16.msra.mxu1 %v1575_v7  ;;  %v1431_v2 = vld [vmem:[#allocation7 + $0xe4] ss:$16 sps:$4 sm:$0xff]   ;;  %v822_v7 = vld [vmem:[#allocation4 + $0xa8] sm:$0xff] }
 0x528   :  { %944 = vmatprep.subr.bf16.mxu0 %v1565_v3  ;;  %985 = vmatprep.subr.bf16.mxu1 %v1585_v10  ;;  %v821_v3 = vld [vmem:[#allocation4 + $0xa0] sm:$0xff] }
 0x529   :  { %974 = vmatprep.mubr.bf16.mxu0 %v1534_v0  ;;  %1015 = vmatprep.mubr.bf16.mxu1 %v1534_v0 }
 0x52b   :  { %945 = vmatpush1.bf16.msra.mxu0 %v1568_v4  ;;  %986 = vmatpush1.bf16.msra.mxu1 %v1587_v11 }
 0x52c   :  { %946 = vmatprep.subr.bf16.mxu0 %v1571_v5  ;;  %987 = vmatprep.subr.bf16.mxu1 %v1595_v14 }
 0x52f   :  { %947 = vmatpush1.bf16.msra.mxu0 %v1578_v8  ;;  %988 = vmatpush1.bf16.msra.mxu1 %v1599_v15 }
 0x530   :  { %948 = vmatprep.subr.bf16.mxu0 %v1582_v9  ;;  %989 = vmatprep.subr.bf16.mxu1 %v1602_v16 }
 0x533   :  { %949 = vmatpush1.bf16.msra.mxu0 %v1591_v12  ;;  %990 = vmatpush1.bf16.msra.mxu1 %v1611_v19 }
 0x534   :  { %950 = vmatprep.subr.bf16.mxu0 %v1593_v13  ;;  %991 = vmatprep.subr.bf16.mxu1 %v1614_v20  ;;  %v823_v20 = vld [vmem:[#allocation4 + $0xb0] sm:$0xff] }
 0x537   :  { %951 = vmatpush1.bf16.msra.mxu0 %v1605_v17  ;;  %992 = vmatpush1.bf16.msra.mxu1 %v1623_v23 }
 0x538   :  { %952 = vmatprep.subr.bf16.mxu0 %v1608_v18  ;;  %993 = vmatprep.subr.bf16.mxu1 %v1626_v24  ;;  %v824_v18 = vld [vmem:[#allocation4 + $0xb8] sm:$0xff] }
 0x53b   :  { %953 = vmatpush1.bf16.msra.mxu0 %v1617_v21  ;;  %994 = vmatpush1.bf16.msra.mxu1 %v1635_v27 }
 0x53c   :  { %954 = vmatprep.subr.bf16.mxu0 %v1619_v22  ;;  %995 = vmatprep.subr.bf16.mxu1 %v1638_v28 }
 0x53f   :  { %955 = vmatpush1.bf16.msra.mxu0 %v1629_v25  ;;  %996 = vmatpush1.bf16.msra.mxu1 %v1645_v30 }
 0x540   :  { %956 = vmatprep.subr.bf16.mxu0 %v1632_v26  ;;  %997 = vmatprep.subr.bf16.mxu1 %v1648_v31 }
 0x543   :  { %957 = vmatpush1.bf16.msra.mxu0 %v1641_v29  ;;  %998 = vmatpush1.bf16.msra.mxu1 %v1652_v32 }
 0x544   :  { %1058 = vmatprep.subr.bf16.mxu0 %v1431_v2  ;;  %1099 = vmatprep.subr.bf16.mxu1 %v1573_v6  ;;  %v1460_v2 = vld [vmem:[#allocation7] ss:$16 sps:$4 sm:$0xff]  }
 0x5e6   :  { %v860_v4 = vpop.f32.mrf.mxu0  ;;  %v901_v5 = vpop.f32.mrf.mxu1 }
 0x5e7   :  { %v908_v8 = vadd.f32 %v860_v4, %v821_v3  ;;  %v910_v22 = vadd.f32 %v901_v5, %v823_v20  ;;  %v1461_v3 = vld [vmem:[#allocation7 + $0x8] ss:$16 sps:$4 sm:$0xff]   ;;  %v937_v4 = vld [vmem:[#allocation4 + $0xc0] sm:$0xff] }
 0x5e8   :  { %v862_v9 = vpop.f32.mrf.mxu0  ;;  %v903_v10 = vpop.f32.mrf.mxu1 }
 0x5e9   :  { %v1237_v11 = vmul.f32 -1.442695, %v908_v8  ;;  %v909_v12 = vadd.f32 %v862_v9, %v822_v7  ;;  %v911_v19 = vadd.f32 %v903_v10, %v824_v18  ;;  %v938_v8 = vld [vmem:[#allocation4 + $0xc8] sm:$0xff] }
 0x5ea   :  { %v864_v13 = vpop.f32.mrf.mxu0  ;;  %v905_v14 = vpop.f32.mrf.mxu1 }
 0x5eb   :  { %1383 = vpow2.f32 %v1237_v11  ;;  %v1238_v15 = vmul.f32 -1.442695, %v909_v12  ;;  %v1239_v6 = vmul.f32 -1.442695, %v911_v19  ;;  %v940_v19 = vld [vmem:[#allocation4 + $0xd8] sm:$0xff] }
 0x5ec   :  { %v865_v16 = vpop.f32.mrf.mxu0  ;;  %v906_v17 = vpop.f32.mrf.mxu1 }
 0x5ed   :  { %1385 = vpow2.f32 %v1238_v15 }
 0x5ee   :  { %1387 = vpow2.f32 %v1239_v6  ;;  %v939_v6 = vld [vmem:[#allocation4 + $0xd0] sm:$0xff] }
 0x5f8   :  { %v1384_v21 = vpop.eup %1383 }
 0x5f9   :  { %v915_v23 = vadd.f32 1.0, %v1384_v21 }
 0x5fa   :  { %v1386_v24 = vpop.eup %1385 }
 0x5fb   :  { %1389 = vrcp.f32 %v915_v23  ;;  %v921_v25 = vadd.f32 1.0, %v1386_v24  ;;  %v1388_v26 = vpop.eup %1387 }
 0x5fc   :  { %1391 = vtanh.f32 %v910_v22  ;;  %v928_v30 = vadd.f32 1.0, %v1388_v26 }
 0x5fd   :  { %1393 = vrcp.f32 %v921_v25 }
 0x5fe   :  { %1395 = vrcp.f32 %v928_v30 }
 0x608   :  { %v1390_v27 = vpop.eup %1389 }
 0x609   :  { %v1392_v28 = vpop.eup %1391 }
 0x60a   :  { %v1394_v29 = vpop.eup %1393  ;;  %v932_v31 = vmul.f32 %v1392_v28, %v1390_v27 }
 0x60b   :  { %v931_v32 = vmul.f32 %v1394_v29, %v1844_v50  ;;  %v1396_v54 = vpop.eup %1395  ;;  %v1455_v50 = vld [vmem:[#allocation7 + $0x2c] ss:$16 sps:$4 sm:$0xff]  }
 0x60d   :  { %v1881_v38 = vadd.f32 %v932_v31, %v931_v32 }
 0x60f   :  { %1397 = vtanh.f32 %v1881_v38 }
 0x61c   :  { %v1398_v55 = vpop.eup %1397 }
 0x61d   :  { %v935_v56 = vmul.f32 %v1398_v55, %v1396_v54 }
 0x61f   :  { %v941_v57 = vpack.c.bf16 %v935_v56, %v935_v56 }
 0x621   :  { %975 = vmatmul.mubr.bf16.vlgmr.msra.gmra.mxu0 %v941_v57  ;;  %1016 = vmatmul.mubr.bf16.vlgmr.msra.gmra.mxu1 %v941_v57 }
 0x622   :  { %1059 = vmatpush1.bf16.msra.mxu0 %v1432_v58  ;;  %1100 = vmatpush1.bf16.msra.mxu1 %v1433_v59 }
 0x623   :  { %1060 = vmatprep.subr.bf16.mxu0 %v1434_v60  ;;  %1101 = vmatprep.subr.bf16.mxu1 %v1435_v61  ;;  %v1053_v60 = vld [vmem:[#allocation4 + $0xe0] sm:$0xff] }
 0x624   :  { %1090 = vmatprep.mubr.bf16.mxu0 %v1534_v0  ;;  %1131 = vmatprep.mubr.bf16.mxu1 %v1534_v0  ;;  %v1446_v0 = vld [vmem:[#allocation7 + $0x64] ss:$16 sps:$4 sm:$0xff]  }
 0x626   :  { %1061 = vmatpush1.bf16.msra.mxu0 %v1436_v62  ;;  %1102 = vmatpush1.bf16.msra.mxu1 %v1437_v63  ;;  %v1054_v63 = vld [vmem:[#allocation4 + $0xe8] sm:$0xff] }
 0x627   :  { %1062 = vmatprep.subr.bf16.mxu0 %v1438_v34  ;;  %1103 = vmatprep.subr.bf16.mxu1 %v1439_v1 }
 0x62a   :  { %1063 = vmatpush1.bf16.msra.mxu0 %v1440_v35  ;;  %1104 = vmatpush1.bf16.msra.mxu1 %v1441_v36 }
 0x62b   :  { %1064 = vmatprep.subr.bf16.mxu0 %v1442_v37  ;;  %1105 = vmatprep.subr.bf16.mxu1 %v1443_v39 }
 0x62e   :  { %1065 = vmatpush1.bf16.msra.mxu0 %v1444_v40  ;;  %1106 = vmatpush1.bf16.msra.mxu1 %v1445_v41 }
 0x62f   :  { %1066 = vmatprep.subr.bf16.mxu0 %v1446_v0  ;;  %1107 = vmatprep.subr.bf16.mxu1 %v1447_v42  ;;  %v1056_v42 = vld [vmem:[#allocation4 + $0xf8] sm:$0xff] }
 0x632   :  { %1067 = vmatpush1.bf16.msra.mxu0 %v1448_v43  ;;  %1108 = vmatpush1.bf16.msra.mxu1 %v1449_v44  ;;  %v1055_v44 = vld [vmem:[#allocation4 + $0xf0] sm:$0xff] }
 0x633   :  { %1068 = vmatprep.subr.bf16.mxu0 %v1450_v45  ;;  %1109 = vmatprep.subr.bf16.mxu1 %v1451_v46 }
 0x636   :  { %1069 = vmatpush1.bf16.msra.mxu0 %v1452_v47  ;;  %1110 = vmatpush1.bf16.msra.mxu1 %v1453_v48 }
 0x637   :  { %1070 = vmatprep.subr.bf16.mxu0 %v1454_v49  ;;  %1111 = vmatprep.subr.bf16.mxu1 %v1455_v50 }
 0x63a   :  { %1071 = vmatpush1.bf16.msra.mxu0 %v1456_v33  ;;  %1112 = vmatpush1.bf16.msra.mxu1 %v1457_v51 }
 0x63b   :  { %1072 = vmatprep.subr.bf16.mxu0 %v1458_v52  ;;  %1113 = vmatprep.subr.bf16.mxu1 %v1459_v53 }
 0x63e   :  { %1073 = vmatpush1.bf16.msra.mxu0 %v1460_v2  ;;  %1114 = vmatpush1.bf16.msra.mxu1 %v1461_v3 }
 0x6e1   :  { %v976_v5 = vpop.f32.mrf.mxu0  ;;  %v1017_v7 = vpop.f32.mrf.mxu1 }
 0x6e2   :  { %v1024_v9 = vadd.f32 %v976_v5, %v937_v4  ;;  %v1026_v23 = vadd.f32 %v1017_v7, %v939_v6 }
 0x6e3   :  { %v978_v10 = vpop.f32.mrf.mxu0  ;;  %v1019_v11 = vpop.f32.mrf.mxu1 }
 0x6e4   :  { %v1240_v12 = vmul.f32 -1.442695, %v1024_v9  ;;  %v1025_v13 = vadd.f32 %v978_v10, %v938_v8  ;;  %v1027_v20 = vadd.f32 %v1019_v11, %v940_v19 }
 0x6e5   :  { %v980_v14 = vpop.f32.mrf.mxu0  ;;  %v1021_v15 = vpop.f32.mrf.mxu1 }
 0x6e6   :  { %1399 = vpow2.f32 %v1240_v12  ;;  %v1241_v16 = vmul.f32 -1.442695, %v1025_v13  ;;  %v1242_v21 = vmul.f32 -1.442695, %v1027_v20 }
 0x6e7   :  { %v981_v17 = vpop.f32.mrf.mxu0  ;;  %v1022_v18 = vpop.f32.mrf.mxu1 }
 0x6e8   :  { %1401 = vpow2.f32 %v1241_v16 }
 0x6e9   :  { %1403 = vpow2.f32 %v1242_v21 }
 0x6f3   :  { %v1400_v22 = vpop.eup %1399 }
 0x6f4   :  { %v1031_v24 = vadd.f32 1.0, %v1400_v22 }
 0x6f5   :  { %v1402_v25 = vpop.eup %1401 }
 0x6f6   :  { %1405 = vrcp.f32 %v1031_v24  ;;  %v1037_v26 = vadd.f32 1.0, %v1402_v25  ;;  %v1404_v27 = vpop.eup %1403 }
 0x6f7   :  { %1407 = vtanh.f32 %v1026_v23  ;;  %v1044_v31 = vadd.f32 1.0, %v1404_v27 }
 0x6f8   :  { %1409 = vrcp.f32 %v1037_v26 }
 0x6f9   :  { %1411 = vrcp.f32 %v1044_v31 }
 0x703   :  { %v1406_v28 = vpop.eup %1405 }
 0x704   :  { %v1408_v29 = vpop.eup %1407 }
 0x705   :  { %v1410_v30 = vpop.eup %1409  ;;  %v1048_v32 = vmul.f32 %v1408_v29, %v1406_v28 }
 0x706   :  { %v1047_v54 = vmul.f32 %v1410_v30, %v1881_v38  ;;  %v1412_v56 = vpop.eup %1411 }
 0x708   :  { %v1049_v55 = vadd.f32 %v1048_v32, %v1047_v54 }
 0x70a   :  { %1413 = vtanh.f32 %v1049_v55 }
 0x717   :  { %v1414_v57 = vpop.eup %1413 }
 0x718   :  { %v1051_v58 = vmul.f32 %v1414_v57, %v1412_v56 }
 0x71a   :  { %v1057_v59 = vpack.c.bf16 %v1051_v58, %v1051_v58 }
 0x71c   :  { %1091 = vmatmul.mubr.bf16.vlgmr.msra.gmra.mxu0 %v1057_v59  ;;  %1132 = vmatmul.mubr.bf16.vlgmr.msra.gmra.mxu1 %v1057_v59 }
 0x7dc   :  { %v1092_v61 = vpop.f32.mrf.mxu0  ;;  %v1133_v62 = vpop.f32.mrf.mxu1 }
 0x7dd   :  { %v1140_v34 = vadd.f32 %v1092_v61, %v1053_v60  ;;  %v1142_v47 = vadd.f32 %v1133_v62, %v1055_v44 }
 0x7de   :  { %v1094_v1 = vpop.f32.mrf.mxu0  ;;  %v1135_v35 = vpop.f32.mrf.mxu1 }
 0x7df   :  { %v1243_v36 = vmul.f32 -1.442695, %v1140_v34  ;;  %v1141_v37 = vadd.f32 %v1094_v1, %v1054_v63  ;;  %v1143_v43 = vadd.f32 %v1135_v35, %v1056_v42 }
 0x7e0   :  { %v1096_v39 = vpop.f32.mrf.mxu0  ;;  %v1137_v38 = vpop.f32.mrf.mxu1 }
 0x7e1   :  { %1415 = vpow2.f32 %v1243_v36  ;;  %v1244_v40 = vmul.f32 -1.442695, %v1141_v37  ;;  %v1245_v45 = vmul.f32 -1.442695, %v1143_v43 }
 0x7e2   :  { %v1097_v41 = vpop.f32.mrf.mxu0  ;;  %v1138_v0 = vpop.f32.mrf.mxu1 }
 0x7e3   :  { %1417 = vpow2.f32 %v1244_v40 }
 0x7e4   :  { %1419 = vpow2.f32 %v1245_v45 }
 0x7ee   :  { %v1416_v46 = vpop.eup %1415 }
 0x7ef   :  { %v1147_v48 = vadd.f32 1.0, %v1416_v46 }
 0x7f0   :  { %v1418_v49 = vpop.eup %1417 }
 0x7f1   :  { %1421 = vrcp.f32 %v1147_v48  ;;  %v1153_v50 = vadd.f32 1.0, %v1418_v49  ;;  %v1420_v33 = vpop.eup %1419 }
 0x7f2   :  { %1423 = vtanh.f32 %v1142_v47  ;;  %v1160_v2 = vadd.f32 1.0, %v1420_v33 }
 0x7f3   :  { %1425 = vrcp.f32 %v1153_v50 }
 0x7f4   :  { %1427 = vrcp.f32 %v1160_v2 }
 0x7fe   :  { %v1422_v51 = vpop.eup %1421 }
 0x7ff   :  { %v1424_v52 = vpop.eup %1423 }
 0x800   :  { %v1426_v53 = vpop.eup %1425  ;;  %v1164_v3 = vmul.f32 %v1424_v52, %v1422_v51 }
 0x801   :  { %v1163_v4 = vmul.f32 %v1426_v53, %v1049_v55  ;;  %v1428_v7 = vpop.eup %1427 }
 0x803   :  { %v1165_v5 = vadd.f32 %v1164_v3, %v1163_v4 }
 0x805   :  { %1429 = vtanh.f32 %v1165_v5 }
 0x812   :  { %v1430_v8 = vpop.eup %1429 }
 0x813   :  { %v1167_v9 = vmul.f32 %v1430_v8, %v1428_v7 }
 0x815   :  { %1173 = vst [vmem:[#allocation9] sm:$0xff] %v1167_v9 }
 0x816   :  { %1513 = shalt.err (!%p1510_p0)
}
 0x817   :  { %1183 = dma.vmem_to_hbm [thread:$0]  %s1181_s1, 128, %s1892_s2, [#allocation6]  }
 0x818   :  { %1526 = dma.done.wait [#allocation6], 128  }
 0x819   :  { %1527 = vsyncadd [#allocation6], 4294967168 }
 0x81a   :  { %1187 = vsyncpa [#allocation5], 1 }
 0x81b   :  { %1188 = vsyncpa [#allocation8], 1 }
 0x81c   :  { %1189 = vsyncpa [#allocation6], 1 }

</bundles_post_ra>
